<compile_context>
chip_gen: v6e
topology: v6e:2x2x1
jax: 0.10.0
libtpu: 0.0.40
codegen_flags: <defaults>
</compile_context>

<pallas_src>
import jax
import jax.numpy as jnp
import numpy as np
from jax.experimental import pallas as pl
from jax.experimental.pallas import tpu as pltpu  # noqa: F401  (no TPU-specific params needed)

# Config consistent with the module (kind='add', confidence=True, scene_disp=False =>
# per-token dim is 3 = [x, y, conf], so embed_dim must be 3).
B = 2          # batch
N = 8          # n_words (sequence length)
D = 3          # embed_dim
A = 3          # d_attention (defaults to embed_dim)
H = 2          # num_heads
L = 2          # n_layers (decoder)
T = 1          # n_target_dim (!= embed_dim -> end_layer linear applied)
BN = B * N
SCALE = float(1.0 / np.sqrt(A))
EPS = 1e-5
NEG_REF = float(-np.finfo(np.float32).max)   # reference-only mask value (matches torch)
MASK_IN = -30.0    # in-batch masked entries: finite & identical -> fully-masked rows stay uniform
MASK_XB = -200.0   # cross-batch entries: exp underflows to 0 -> no cross-batch leakage

# Weight-slab layout (all chunk starts 8-row aligned, one lane tile wide).
WCOLS = H * (2 * A + D)                  # 18
ROW_ATTN = 0                             # 4 chunks x 8 rows: fused [q*scale | k | v@Wo^T] per head
ROW_FFN = ROW_ATTN + 8 * (2 * L)         # 32: L chunks x 8 rows: rows 0..D-1 = W^T, row D = bias
ROW_LN = ROW_FFN + 8 * L                 # 48: 3L chunks x BN rows: cols [0:D]=gamma, [D:2D]=beta (batch-tiled)
ROW_END = ROW_LN + BN * 3 * L            # 144: rows 0..D-1 = W^T, row D = bias
WROWS = ROW_END + 8                      # 152


def _lin3(h, wt):
    """h @ wt with the K=3 contraction done as 3 VPU broadcast-FMAs (no MXU push/drain).
    h: (BN, 3); wt: (3, F) -> (BN, F)."""
    return (h[:, 0:1] * wt[0:1, :]
            + h[:, 1:2] * wt[1:2, :]
            + h[:, 2:3] * wt[2:3, :])


def _decoder_stack_kernel(x_ref, mask_ref, w_ref, o_ref):
    x = x_ref[...]            # (BN, D) embedded decoder tokens, batch folded into sublanes
    mult = mask_ref[0]        # (BN, BN): 1.0 allowed / 0.0 masked (block-diagonal)
    madd = mask_ref[1]        # (BN, BN): 0 allowed / -30 in-batch masked / -200 cross-batch
    inv_nd = 1.0 / (N * D)

    def mha(h, m):
        # Fused per-block projection: [Wq^T*scale | Wk^T | Wv^T @ Wout_h^T] per head, one K=3 proj.
        w = w_ref[8 * m:8 * m + D, :]                      # (D, 18)
        qkv = _lin3(h, w)                                  # (BN, 18)
        out = None
        for hh in range(H):
            base = hh * (2 * A + D)
            q = qkv[:, base:base + A]
            k = qkv[:, base + A:base + 2 * A]
            vp = qkv[:, base + 2 * A:base + 2 * A + D]     # value already projected by Wout
            # Single 2-D bf16 MXU matmul per head (batch is in the sublanes).
            dots = jnp.einsum('nd,md->nm',
                              q.astype(jnp.bfloat16), k.astype(jnp.bfloat16),
                              preferred_element_type=jnp.float32)        # (BN, BN)
            # masked-fill without max-subtract: masked scores become an exact constant.
            dots = dots * mult + madd
            p = jnp.exp(dots)
            p = p * pl.reciprocal(jnp.sum(p, axis=-1, keepdims=True), approx=True)
            hv = jnp.dot(p.astype(jnp.bfloat16), vp.astype(jnp.bfloat16),
                         preferred_element_type=jnp.float32)             # (BN, D)
            out = hv if out is None else out + hv
        return out

    def layer_norm(y, idx):
        # nn.LayerNorm([n_words, embed_dim]): statistics over BOTH token & feature dims per batch.
        gb = w_ref[ROW_LN + BN * idx: ROW_LN + BN * (idx + 1), 0:2 * D]  # (BN, 2D) gamma|beta
        y3 = y.reshape(B, N, D)               # tile-aligned leading-dim split (layout-preserving)
        s1 = jnp.sum(jnp.sum(y3, axis=2, keepdims=True), axis=1, keepdims=True)   # (B,1,1)
        s2 = jnp.sum(jnp.sum(y3 * y3, axis=2, keepdims=True), axis=1, keepdims=True)
        mu = s1 * inv_nd
        var = jnp.maximum(s2 * inv_nd - mu * mu, 0.0)      # clamp one-pass variance
        yn = (y3 - mu) * jax.lax.rsqrt(var + EPS)
        return yn.reshape(BN, D) * gb[:, 0:D] + gb[:, D:2 * D]

    for l in range(L):
        h1 = layer_norm(mha(x, 2 * l) + x, 3 * l)
        h2 = layer_norm(mha(h1, 2 * l + 1) + h1, 3 * l + 1)
        fw = w_ref[ROW_FFN + 8 * l: ROW_FFN + 8 * l + D + 1, 0:D]        # (D+1, D)
        f = jnp.maximum(_lin3(h2, fw[0:D]) + fw[D:D + 1], 0.0)
        x = layer_norm(f + h2, 3 * l + 2)

    # end_layer Linear(D -> T); weight^T and bias packed as (D+1, T).
    we = w_ref[ROW_END:ROW_END + D + 1, 0:T]
    o_ref[...] = _lin3(x, we[0:D]) + we[D:D + 1]


def pack_params(p):
    """One-time parameter prep: fuse per-head Q/K/V (scale folded into Q, Wout folded into V),
    transpose FFN / end weights, tile LayerNorm gamma/beta over the flattened batch, and pack
    everything into ONE (152, 18) f32 slab so the kernel needs a single weight DMA."""
    slab = np.zeros((WROWS, WCOLS), np.float32)
    for l in range(L):
        for blk in range(2):
            wq = np.asarray(p[f"wq{blk + 1}"][l])          # (H, A, D)
            wk = np.asarray(p[f"wk{blk + 1}"][l])
            wv = np.asarray(p[f"wv{blk + 1}"][l])
            wo = np.asarray(p[f"wo{blk + 1}"][l])          # (D, H*A)
            r = ROW_ATTN + 8 * (2 * l + blk)
            for hh in range(H):
                c = hh * (2 * A + D)
                wo_h = wo[:, hh * A:(hh + 1) * A]                         # (D, A)
                slab[r:r + D, c:c + A] = wq[hh].T * SCALE                 # (D, A)
                slab[r:r + D, c + A:c + 2 * A] = wk[hh].T                 # (D, A)
                slab[r:r + D, c + 2 * A:c + 2 * A + D] = wv[hh].T @ wo_h.T  # (D, D) = Wv'_h
        r = ROW_FFN + 8 * l
        slab[r:r + D, 0:D] = np.asarray(p["fw"][l]).T
        slab[r + D, 0:D] = np.asarray(p["fb"][l])[0]
        for i in range(3):
            r = ROW_LN + BN * (3 * l + i)
            slab[r:r + BN, 0:D] = np.tile(np.asarray(p["lg"][l, i]), (B, 1))
            slab[r:r + BN, D:2 * D] = np.tile(np.asarray(p["lb"][l, i]), (B, 1))
    slab[ROW_END:ROW_END + D, 0:T] = np.asarray(p["lw"]).T
    slab[ROW_END + D, 0:T] = np.asarray(p["lbias"])[0]
    return jnp.asarray(slab)


def transformer_forward(encoder_input, decoder_input, wslab):
    # InputEmbedding(encoder_input): only its keypoint mask is consumed downstream.
    mask_enc = encoder_input.reshape(B, N, 3)[:, :, -1] > 0
    # InputEmbedding(decoder_input): reshape + zero occluded/padded tokens; flatten batch.
    dec = decoder_input.reshape(B, N, 3)
    mask_dec = dec[:, :, -1] > 0
    x = jnp.where(mask_dec[:, :, None], dec, 0.0).astype(jnp.float32).reshape(BN, D)
    # Block-diagonal (BN, BN) attention mask from the ENCODER mask; diagonal always removed.
    pair = mask_enc[:, :, None] & mask_enc[:, None, :]
    allowed = pair & ~jnp.eye(N, dtype=bool)[None]                        # (B, N, N)
    eye_b = jnp.eye(B, dtype=bool)
    allowed_flat = (allowed[:, :, None, :] & eye_b[:, None, :, None]).reshape(BN, BN)
    same_batch = jnp.broadcast_to(eye_b[:, None, :, None], (B, N, B, N)).reshape(BN, BN)
    mult = allowed_flat.astype(jnp.float32)
    madd = jnp.where(allowed_flat, 0.0,
                     jnp.where(same_batch, MASK_IN, MASK_XB)).astype(jnp.float32)
    maskpack = jnp.stack([mult, madd], axis=0)                            # (2, BN, BN)

    out = pl.pallas_call(
        _decoder_stack_kernel,
        out_shape=jax.ShapeDtypeStruct((BN, T), jnp.float32),
        # No grid: single invocation, everything resident in VMEM, no pipeline scaffolding.
        in_specs=[
            pl.BlockSpec((BN, D), lambda: (0, 0)),
            pl.BlockSpec((2, BN, BN), lambda: (0, 0, 0)),
            pl.BlockSpec((WROWS, WCOLS), lambda: (0, 0)),
        ],
        out_specs=pl.BlockSpec((BN, T), lambda: (0, 0)),
    )(x, maskpack, wslab)
    # end_layer rearrange 'b n t -> b (n t)'; kept in the wrapper (free XLA reshape) to avoid an
    # in-kernel 16-element sublane->lane relayout of the final (BN, 1) column.
    return out.reshape(B, N * T)


def ref_forward(encoder_input, decoder_input, p):
    """Pure-JAX reference mirroring the PyTorch semantics (uses the original unpacked params)."""
    enc = encoder_input.reshape(B, N, 3)
    mask_enc = enc[:, :, -1] > 0
    dec = decoder_input.reshape(B, N, 3)
    mask_dec = dec[:, :, -1] > 0
    x = jnp.where(mask_dec[:, :, None], dec, 0.0)
    pair = mask_enc[:, :, None] & mask_enc[:, None, :]
    allowed = pair & ~jnp.eye(N, dtype=bool)[None]

    def mha(h, wq, wk, wv, wo):
        outs = []
        for hh in range(H):
            q = jnp.einsum('bnd,ad->bna', h, wq[hh])
            k = jnp.einsum('bnd,ad->bna', h, wk[hh])
            v = jnp.einsum('bnd,ad->bna', h, wv[hh])
            dots = jnp.einsum('bia,bja->bij', q, k) * SCALE
            dots = jnp.where(allowed, dots, NEG_REF)
            attn = jax.nn.softmax(dots, axis=-1)
            outs.append(jnp.einsum('bij,bja->bia', attn, v))
        cat = jnp.concatenate(outs, axis=-1)
        return jnp.einsum('bnc,dc->bnd', cat, wo)

    def ln(y, g, b):
        mu = jnp.mean(y, axis=(1, 2), keepdims=True)
        var = jnp.mean((y - mu) ** 2, axis=(1, 2), keepdims=True)
        return (y - mu) / jnp.sqrt(var + EPS) * g + b

    for l in range(L):
        a1 = mha(x, p["wq1"][l], p["wk1"][l], p["wv1"][l], p["wo1"][l])
        h1 = ln(a1 + x, p["lg"][l, 0], p["lb"][l, 0])
        a2 = mha(h1, p["wq2"][l], p["wk2"][l], p["wv2"][l], p["wo2"][l])
        h2 = ln(a2 + h1, p["lg"][l, 1], p["lb"][l, 1])
        f = jax.nn.relu(jnp.einsum('bnd,ed->bne', h2, p["fw"][l]) + p["fb"][l][0])
        x = ln(f + h2, p["lg"][l, 2], p["lb"][l, 2])
    out = jnp.einsum('bnd,td->bnt', x, p["lw"]) + p["lbias"][0]
    return out.reshape(B, N * T)


def init_params(key):
    ks = jax.random.split(key, 12)
    u = lambda k, shape: jax.random.uniform(k, shape, jnp.float32, -0.5, 0.5)
    return dict(
        wq1=u(ks[0], (L, H, A, D)), wk1=u(ks[1], (L, H, A, D)), wv1=u(ks[2], (L, H, A, D)),
        wo1=u(ks[3], (L, D, H * A)),
        wq2=u(ks[4], (L, H, A, D)), wk2=u(ks[5], (L, H, A, D)), wv2=u(ks[6], (L, H, A, D)),
        wo2=u(ks[7], (L, D, H * A)),
        fw=u(ks[8], (L, D, D)), fb=u(ks[9], (L, 1, D)),
        # LayerNorm affine params (PyTorch default init: ones / zeros)
        lg=jnp.ones((L, 3, N, D), jnp.float32), lb=jnp.zeros((L, 3, N, D), jnp.float32),
        lw=u(ks[10], (T, D)), lbias=u(ks[11], (1, T)),
    )
    # TODO(synk): InputEmbedding.pad (torch.load('docs/tensor.pt')) is only used on the
    # scene_disp branch, which is not exercised here; no checkpoint is loaded.


if __name__ == "__main__":
    key = jax.random.PRNGKey(0)
    kp, ke, kd = jax.random.split(key, 3)
    params = init_params(kp)
    wslab = pack_params(params)   # one-time param prep: QKV fusion, Wout fold, slab packing
    # inputs: flattened keypoints (B, n_words*3); ~half of the conf values are <=0,
    # which exercises the masking / zeroing / fully-masked-row paths.
    encoder_input = jax.random.normal(ke, (B, N * 3), jnp.float32)
    decoder_input = jax.random.normal(kd, (B, N * 3), jnp.float32)

    out = transformer_forward(encoder_input, decoder_input, wslab)
    out = jax.block_until_ready(out)

    ref = ref_forward(encoder_input, decoder_input, params)
    # Intended divergences from the reference: bf16 MXU operands (per perf feedback; the JAX
    # reference einsums also run at default/bf16 matmul precision but round at different points),
    # the EUP approximate reciprocal in the softmax, the folded Wv@Wout^T weights, and
    # FMA-vs-matmul accumulation order -> 3e-2 tolerance.
    np.testing.assert_allclose(np.asarray(out), np.asarray(ref), atol=3e-2, rtol=3e-2)
    print("KERNEL_OK")
</pallas_src>

<mosaic_0001>
module attributes {stable_mosaic.version = 11 : i64} {
  func.func @_decoder_stack_kernel(%arg0: memref<16x3xf32, #tpu.memory_space<vmem>>, %arg1: memref<2x16x16xf32, #tpu.memory_space<vmem>>, %arg2: memref<152x18xf32, #tpu.memory_space<vmem>>, %arg3: memref<16x1xf32, #tpu.memory_space<vmem>>) attributes {dimension_semantics = [], scalar_prefetch = 0 : i64, scratch_operands = 0 : i64, tpu.core_type = #tpu.core_type<tc>} {
    %c0 = arith.constant 0 : index
    %c0_0 = arith.constant 0 : index
    %0 = vector.load %arg0[%c0, %c0_0] : memref<16x3xf32, #tpu.memory_space<vmem>>, vector<16x3xf32>
    %c0_1 = arith.constant 0 : index
    %c0_2 = arith.constant 0 : index
    %c0_3 = arith.constant 0 : index
    %1 = vector.load %arg1[%c0_1, %c0_2, %c0_3] : memref<2x16x16xf32, #tpu.memory_space<vmem>>, vector<1x16x16xf32>
    %2 = vector.shape_cast %1 : vector<1x16x16xf32> to vector<16x16xf32>
    %c1 = arith.constant 1 : index
    %c0_4 = arith.constant 0 : index
    %c0_5 = arith.constant 0 : index
    %3 = vector.load %arg1[%c1, %c0_4, %c0_5] : memref<2x16x16xf32, #tpu.memory_space<vmem>>, vector<1x16x16xf32>
    %4 = vector.shape_cast %3 : vector<1x16x16xf32> to vector<16x16xf32>
    %c0_6 = arith.constant 0 : index
    %c0_7 = arith.constant 0 : index
    %5 = vector.load %arg2[%c0_6, %c0_7] : memref<152x18xf32, #tpu.memory_space<vmem>>, vector<3x18xf32>
    %6 = vector.extract_strided_slice %0 {offsets = [0, 0], sizes = [16, 1], strides = [1, 1]} : vector<16x3xf32> to vector<16x1xf32>
    %7 = vector.extract_strided_slice %5 {offsets = [0, 0], sizes = [1, 18], strides = [1, 1]} : vector<3x18xf32> to vector<1x18xf32>
    %8 = vector.broadcast %6 : vector<16x1xf32> to vector<16x18xf32>
    %9 = vector.broadcast %7 : vector<1x18xf32> to vector<16x18xf32>
    %10 = arith.mulf %8, %9 : vector<16x18xf32>
    %11 = vector.extract_strided_slice %0 {offsets = [0, 1], sizes = [16, 1], strides = [1, 1]} : vector<16x3xf32> to vector<16x1xf32>
    %12 = vector.extract_strided_slice %5 {offsets = [1, 0], sizes = [1, 18], strides = [1, 1]} : vector<3x18xf32> to vector<1x18xf32>
    %13 = vector.broadcast %11 : vector<16x1xf32> to vector<16x18xf32>
    %14 = vector.broadcast %12 : vector<1x18xf32> to vector<16x18xf32>
    %15 = arith.mulf %13, %14 : vector<16x18xf32>
    %16 = arith.addf %10, %15 : vector<16x18xf32>
    %17 = vector.extract_strided_slice %0 {offsets = [0, 2], sizes = [16, 1], strides = [1, 1]} : vector<16x3xf32> to vector<16x1xf32>
    %18 = vector.extract_strided_slice %5 {offsets = [2, 0], sizes = [1, 18], strides = [1, 1]} : vector<3x18xf32> to vector<1x18xf32>
    %19 = vector.broadcast %17 : vector<16x1xf32> to vector<16x18xf32>
    %20 = vector.broadcast %18 : vector<1x18xf32> to vector<16x18xf32>
    %21 = arith.mulf %19, %20 : vector<16x18xf32>
    %22 = arith.addf %16, %21 : vector<16x18xf32>
    %23 = vector.extract_strided_slice %22 {offsets = [0, 0], sizes = [16, 3], strides = [1, 1]} : vector<16x18xf32> to vector<16x3xf32>
    %24 = vector.extract_strided_slice %22 {offsets = [0, 3], sizes = [16, 3], strides = [1, 1]} : vector<16x18xf32> to vector<16x3xf32>
    %25 = vector.extract_strided_slice %22 {offsets = [0, 6], sizes = [16, 3], strides = [1, 1]} : vector<16x18xf32> to vector<16x3xf32>
    %26 = arith.truncf %23 : vector<16x3xf32> to vector<16x3xbf16>
    %27 = arith.truncf %24 : vector<16x3xf32> to vector<16x3xbf16>
    "tpu.trace_start"() <{level = 10 : i32, message = "nd,md->nm"}> : () -> ()
    %cst = arith.constant dense<0.000000e+00> : vector<16x16xf32>
    %28 = tpu.matmul %26, %27, %cst {dimension_numbers = #tpu.dot_dimension_numbers<[1], [1], [0], [0], [0, 0, 1, 0], [], []>} : vector<16x3xbf16>, vector<16x3xbf16>, vector<16x16xf32> -> vector<16x16xf32>
    "tpu.trace_stop"() : () -> ()
    %29 = arith.mulf %28, %2 : vector<16x16xf32>
    %30 = arith.addf %29, %4 : vector<16x16xf32>
    %31 = math.exp %30 : vector<16x16xf32>
    %cst_8 = arith.constant dense<0.000000e+00> : vector<16xf32>
    %32 = vector.multi_reduction <add>, %31, %cst_8 [1] : vector<16x16xf32> to vector<16xf32>
    %33 = vector.shape_cast %32 : vector<16xf32> to vector<16x1xf32>
    %34 = tpu.reciprocal %33 {approx = true} : vector<16x1xf32> -> vector<16x1xf32>
    %35 = vector.broadcast %34 : vector<16x1xf32> to vector<16x16xf32>
    %36 = arith.mulf %31, %35 : vector<16x16xf32>
    %37 = arith.truncf %36 : vector<16x16xf32> to vector<16x16xbf16>
    %38 = arith.truncf %25 : vector<16x3xf32> to vector<16x3xbf16>
    %cst_9 = arith.constant dense<0.000000e+00> : vector<16x3xf32>
    %39 = tpu.matmul %37, %38, %cst_9 {dimension_numbers = #tpu.dot_dimension_numbers<[1], [0], [0], [1], [0, 0, 1, 1], [], []>} : vector<16x16xbf16>, vector<16x3xbf16>, vector<16x3xf32> -> vector<16x3xf32>
    %40 = vector.extract_strided_slice %22 {offsets = [0, 9], sizes = [16, 3], strides = [1, 1]} : vector<16x18xf32> to vector<16x3xf32>
    %41 = vector.extract_strided_slice %22 {offsets = [0, 12], sizes = [16, 3], strides = [1, 1]} : vector<16x18xf32> to vector<16x3xf32>
    %42 = vector.extract_strided_slice %22 {offsets = [0, 15], sizes = [16, 3], strides = [1, 1]} : vector<16x18xf32> to vector<16x3xf32>
    %43 = arith.truncf %40 : vector<16x3xf32> to vector<16x3xbf16>
    %44 = arith.truncf %41 : vector<16x3xf32> to vector<16x3xbf16>
    "tpu.trace_start"() <{level = 10 : i32, message = "nd,md->nm"}> : () -> ()
    %cst_10 = arith.constant dense<0.000000e+00> : vector<16x16xf32>
    %45 = tpu.matmul %43, %44, %cst_10 {dimension_numbers = #tpu.dot_dimension_numbers<[1], [1], [0], [0], [0, 0, 1, 0], [], []>} : vector<16x3xbf16>, vector<16x3xbf16>, vector<16x16xf32> -> vector<16x16xf32>
    "tpu.trace_stop"() : () -> ()
    %46 = arith.mulf %45, %2 : vector<16x16xf32>
    %47 = arith.addf %46, %4 : vector<16x16xf32>
    %48 = math.exp %47 : vector<16x16xf32>
    %cst_11 = arith.constant dense<0.000000e+00> : vector<16xf32>
    %49 = vector.multi_reduction <add>, %48, %cst_11 [1] : vector<16x16xf32> to vector<16xf32>
    %50 = vector.shape_cast %49 : vector<16xf32> to vector<16x1xf32>
    %51 = tpu.reciprocal %50 {approx = true} : vector<16x1xf32> -> vector<16x1xf32>
    %52 = vector.broadcast %51 : vector<16x1xf32> to vector<16x16xf32>
    %53 = arith.mulf %48, %52 : vector<16x16xf32>
    %54 = arith.truncf %53 : vector<16x16xf32> to vector<16x16xbf16>
    %55 = arith.truncf %42 : vector<16x3xf32> to vector<16x3xbf16>
    %cst_12 = arith.constant dense<0.000000e+00> : vector<16x3xf32>
    %56 = tpu.matmul %54, %55, %cst_12 {dimension_numbers = #tpu.dot_dimension_numbers<[1], [0], [0], [1], [0, 0, 1, 1], [], []>} : vector<16x16xbf16>, vector<16x3xbf16>, vector<16x3xf32> -> vector<16x3xf32>
    %57 = arith.addf %39, %56 : vector<16x3xf32>
    %58 = arith.addf %57, %0 : vector<16x3xf32>
    %c48 = arith.constant 48 : index
    %c0_13 = arith.constant 0 : index
    %59 = vector.load %arg2[%c48, %c0_13] : memref<152x18xf32, #tpu.memory_space<vmem>>, vector<16x6xf32>
    %60 = vector.shape_cast %58 : vector<16x3xf32> to vector<2x8x3xf32>
    %cst_14 = arith.constant dense<0.000000e+00> : vector<2x8xf32>
    %61 = vector.multi_reduction <add>, %60, %cst_14 [2] : vector<2x8x3xf32> to vector<2x8xf32>
    %62 = vector.shape_cast %61 : vector<2x8xf32> to vector<2x8x1xf32>
    %cst_15 = arith.constant dense<0.000000e+00> : vector<2x1xf32>
    %63 = vector.multi_reduction <add>, %62, %cst_15 [1] : vector<2x8x1xf32> to vector<2x1xf32>
    %64 = vector.shape_cast %63 : vector<2x1xf32> to vector<2x1x1xf32>
    %65 = arith.mulf %60, %60 : vector<2x8x3xf32>
    %cst_16 = arith.constant dense<0.000000e+00> : vector<2x8xf32>
    %66 = vector.multi_reduction <add>, %65, %cst_16 [2] : vector<2x8x3xf32> to vector<2x8xf32>
    %67 = vector.shape_cast %66 : vector<2x8xf32> to vector<2x8x1xf32>
    %cst_17 = arith.constant dense<0.000000e+00> : vector<2x1xf32>
    %68 = vector.multi_reduction <add>, %67, %cst_17 [1] : vector<2x8x1xf32> to vector<2x1xf32>
    %69 = vector.shape_cast %68 : vector<2x1xf32> to vector<2x1x1xf32>
    %cst_18 = arith.constant 0.0416666679 : f32
    %70 = vector.broadcast %cst_18 : f32 to vector<2x1x1xf32>
    %71 = arith.mulf %64, %70 : vector<2x1x1xf32>
    %cst_19 = arith.constant 0.0416666679 : f32
    %72 = vector.broadcast %cst_19 : f32 to vector<2x1x1xf32>
    %73 = arith.mulf %69, %72 : vector<2x1x1xf32>
    %74 = arith.mulf %71, %71 : vector<2x1x1xf32>
    %75 = arith.subf %73, %74 : vector<2x1x1xf32>
    %cst_20 = arith.constant 0.000000e+00 : f32
    %76 = vector.broadcast %cst_20 : f32 to vector<2x1x1xf32>
    %77 = arith.maximumf %75, %76 : vector<2x1x1xf32>
    %78 = vector.broadcast %71 : vector<2x1x1xf32> to vector<2x8x3xf32>
    %79 = arith.subf %60, %78 : vector<2x8x3xf32>
    %cst_21 = arith.constant 9.99999974E-6 : f32
    %80 = vector.broadcast %cst_21 : f32 to vector<2x1x1xf32>
    %81 = arith.addf %77, %80 : vector<2x1x1xf32>
    %82 = math.rsqrt %81 : vector<2x1x1xf32>
    %83 = vector.broadcast %82 : vector<2x1x1xf32> to vector<2x8x3xf32>
    %84 = arith.mulf %79, %83 : vector<2x8x3xf32>
    %85 = vector.shape_cast %84 : vector<2x8x3xf32> to vector<16x3xf32>
    %86 = vector.extract_strided_slice %59 {offsets = [0, 0], sizes = [16, 3], strides = [1, 1]} : vector<16x6xf32> to vector<16x3xf32>
    %87 = arith.mulf %85, %86 : vector<16x3xf32>
    %88 = vector.extract_strided_slice %59 {offsets = [0, 3], sizes = [16, 3], strides = [1, 1]} : vector<16x6xf32> to vector<16x3xf32>
    %89 = arith.addf %87, %88 : vector<16x3xf32>
    %c8 = arith.constant 8 : index
    %c0_22 = arith.constant 0 : index
    %90 = vector.load %arg2[%c8, %c0_22] : memref<152x18xf32, #tpu.memory_space<vmem>>, vector<3x18xf32>
    %91 = vector.extract_strided_slice %89 {offsets = [0, 0], sizes = [16, 1], strides = [1, 1]} : vector<16x3xf32> to vector<16x1xf32>
    %92 = vector.extract_strided_slice %90 {offsets = [0, 0], sizes = [1, 18], strides = [1, 1]} : vector<3x18xf32> to vector<1x18xf32>
    %93 = vector.broadcast %91 : vector<16x1xf32> to vector<16x18xf32>
    %94 = vector.broadcast %92 : vector<1x18xf32> to vector<16x18xf32>
    %95 = arith.mulf %93, %94 : vector<16x18xf32>
    %96 = vector.extract_strided_slice %89 {offsets = [0, 1], sizes = [16, 1], strides = [1, 1]} : vector<16x3xf32> to vector<16x1xf32>
    %97 = vector.extract_strided_slice %90 {offsets = [1, 0], sizes = [1, 18], strides = [1, 1]} : vector<3x18xf32> to vector<1x18xf32>
    %98 = vector.broadcast %96 : vector<16x1xf32> to vector<16x18xf32>
    %99 = vector.broadcast %97 : vector<1x18xf32> to vector<16x18xf32>
    %100 = arith.mulf %98, %99 : vector<16x18xf32>
    %101 = arith.addf %95, %100 : vector<16x18xf32>
    %102 = vector.extract_strided_slice %89 {offsets = [0, 2], sizes = [16, 1], strides = [1, 1]} : vector<16x3xf32> to vector<16x1xf32>
    %103 = vector.extract_strided_slice %90 {offsets = [2, 0], sizes = [1, 18], strides = [1, 1]} : vector<3x18xf32> to vector<1x18xf32>
    %104 = vector.broadcast %102 : vector<16x1xf32> to vector<16x18xf32>
    %105 = vector.broadcast %103 : vector<1x18xf32> to vector<16x18xf32>
    %106 = arith.mulf %104, %105 : vector<16x18xf32>
    %107 = arith.addf %101, %106 : vector<16x18xf32>
    %108 = vector.extract_strided_slice %107 {offsets = [0, 0], sizes = [16, 3], strides = [1, 1]} : vector<16x18xf32> to vector<16x3xf32>
    %109 = vector.extract_strided_slice %107 {offsets = [0, 3], sizes = [16, 3], strides = [1, 1]} : vector<16x18xf32> to vector<16x3xf32>
    %110 = vector.extract_strided_slice %107 {offsets = [0, 6], sizes = [16, 3], strides = [1, 1]} : vector<16x18xf32> to vector<16x3xf32>
    %111 = arith.truncf %108 : vector<16x3xf32> to vector<16x3xbf16>
    %112 = arith.truncf %109 : vector<16x3xf32> to vector<16x3xbf16>
    "tpu.trace_start"() <{level = 10 : i32, message = "nd,md->nm"}> : () -> ()
    %cst_23 = arith.constant dense<0.000000e+00> : vector<16x16xf32>
    %113 = tpu.matmul %111, %112, %cst_23 {dimension_numbers = #tpu.dot_dimension_numbers<[1], [1], [0], [0], [0, 0, 1, 0], [], []>} : vector<16x3xbf16>, vector<16x3xbf16>, vector<16x16xf32> -> vector<16x16xf32>
    "tpu.trace_stop"() : () -> ()
    %114 = arith.mulf %113, %2 : vector<16x16xf32>
    %115 = arith.addf %114, %4 : vector<16x16xf32>
    %116 = math.exp %115 : vector<16x16xf32>
    %cst_24 = arith.constant dense<0.000000e+00> : vector<16xf32>
    %117 = vector.multi_reduction <add>, %116, %cst_24 [1] : vector<16x16xf32> to vector<16xf32>
    %118 = vector.shape_cast %117 : vector<16xf32> to vector<16x1xf32>
    %119 = tpu.reciprocal %118 {approx = true} : vector<16x1xf32> -> vector<16x1xf32>
    %120 = vector.broadcast %119 : vector<16x1xf32> to vector<16x16xf32>
    %121 = arith.mulf %116, %120 : vector<16x16xf32>
    %122 = arith.truncf %121 : vector<16x16xf32> to vector<16x16xbf16>
    %123 = arith.truncf %110 : vector<16x3xf32> to vector<16x3xbf16>
    %cst_25 = arith.constant dense<0.000000e+00> : vector<16x3xf32>
    %124 = tpu.matmul %122, %123, %cst_25 {dimension_numbers = #tpu.dot_dimension_numbers<[1], [0], [0], [1], [0, 0, 1, 1], [], []>} : vector<16x16xbf16>, vector<16x3xbf16>, vector<16x3xf32> -> vector<16x3xf32>
    %125 = vector.extract_strided_slice %107 {offsets = [0, 9], sizes = [16, 3], strides = [1, 1]} : vector<16x18xf32> to vector<16x3xf32>
    %126 = vector.extract_strided_slice %107 {offsets = [0, 12], sizes = [16, 3], strides = [1, 1]} : vector<16x18xf32> to vector<16x3xf32>
    %127 = vector.extract_strided_slice %107 {offsets = [0, 15], sizes = [16, 3], strides = [1, 1]} : vector<16x18xf32> to vector<16x3xf32>
    %128 = arith.truncf %125 : vector<16x3xf32> to vector<16x3xbf16>
    %129 = arith.truncf %126 : vector<16x3xf32> to vector<16x3xbf16>
    "tpu.trace_start"() <{level = 10 : i32, message = "nd,md->nm"}> : () -> ()
    %cst_26 = arith.constant dense<0.000000e+00> : vector<16x16xf32>
    %130 = tpu.matmul %128, %129, %cst_26 {dimension_numbers = #tpu.dot_dimension_numbers<[1], [1], [0], [0], [0, 0, 1, 0], [], []>} : vector<16x3xbf16>, vector<16x3xbf16>, vector<16x16xf32> -> vector<16x16xf32>
    "tpu.trace_stop"() : () -> ()
    %131 = arith.mulf %130, %2 : vector<16x16xf32>
    %132 = arith.addf %131, %4 : vector<16x16xf32>
    %133 = math.exp %132 : vector<16x16xf32>
    %cst_27 = arith.constant dense<0.000000e+00> : vector<16xf32>
    %134 = vector.multi_reduction <add>, %133, %cst_27 [1] : vector<16x16xf32> to vector<16xf32>
    %135 = vector.shape_cast %134 : vector<16xf32> to vector<16x1xf32>
    %136 = tpu.reciprocal %135 {approx = true} : vector<16x1xf32> -> vector<16x1xf32>
    %137 = vector.broadcast %136 : vector<16x1xf32> to vector<16x16xf32>
    %138 = arith.mulf %133, %137 : vector<16x16xf32>
    %139 = arith.truncf %138 : vector<16x16xf32> to vector<16x16xbf16>
    %140 = arith.truncf %127 : vector<16x3xf32> to vector<16x3xbf16>
    %cst_28 = arith.constant dense<0.000000e+00> : vector<16x3xf32>
    %141 = tpu.matmul %139, %140, %cst_28 {dimension_numbers = #tpu.dot_dimension_numbers<[1], [0], [0], [1], [0, 0, 1, 1], [], []>} : vector<16x16xbf16>, vector<16x3xbf16>, vector<16x3xf32> -> vector<16x3xf32>
    %142 = arith.addf %124, %141 : vector<16x3xf32>
    %143 = arith.addf %142, %89 : vector<16x3xf32>
    %c64 = arith.constant 64 : index
    %c0_29 = arith.constant 0 : index
    %144 = vector.load %arg2[%c64, %c0_29] : memref<152x18xf32, #tpu.memory_space<vmem>>, vector<16x6xf32>
    %145 = vector.shape_cast %143 : vector<16x3xf32> to vector<2x8x3xf32>
    %cst_30 = arith.constant dense<0.000000e+00> : vector<2x8xf32>
    %146 = vector.multi_reduction <add>, %145, %cst_30 [2] : vector<2x8x3xf32> to vector<2x8xf32>
    %147 = vector.shape_cast %146 : vector<2x8xf32> to vector<2x8x1xf32>
    %cst_31 = arith.constant dense<0.000000e+00> : vector<2x1xf32>
    %148 = vector.multi_reduction <add>, %147, %cst_31 [1] : vector<2x8x1xf32> to vector<2x1xf32>
    %149 = vector.shape_cast %148 : vector<2x1xf32> to vector<2x1x1xf32>
    %150 = arith.mulf %145, %145 : vector<2x8x3xf32>
    %cst_32 = arith.constant dense<0.000000e+00> : vector<2x8xf32>
    %151 = vector.multi_reduction <add>, %150, %cst_32 [2] : vector<2x8x3xf32> to vector<2x8xf32>
    %152 = vector.shape_cast %151 : vector<2x8xf32> to vector<2x8x1xf32>
    %cst_33 = arith.constant dense<0.000000e+00> : vector<2x1xf32>
    %153 = vector.multi_reduction <add>, %152, %cst_33 [1] : vector<2x8x1xf32> to vector<2x1xf32>
    %154 = vector.shape_cast %153 : vector<2x1xf32> to vector<2x1x1xf32>
    %cst_34 = arith.constant 0.0416666679 : f32
    %155 = vector.broadcast %cst_34 : f32 to vector<2x1x1xf32>
    %156 = arith.mulf %149, %155 : vector<2x1x1xf32>
    %cst_35 = arith.constant 0.0416666679 : f32
    %157 = vector.broadcast %cst_35 : f32 to vector<2x1x1xf32>
    %158 = arith.mulf %154, %157 : vector<2x1x1xf32>
    %159 = arith.mulf %156, %156 : vector<2x1x1xf32>
    %160 = arith.subf %158, %159 : vector<2x1x1xf32>
    %cst_36 = arith.constant 0.000000e+00 : f32
    %161 = vector.broadcast %cst_36 : f32 to vector<2x1x1xf32>
    %162 = arith.maximumf %160, %161 : vector<2x1x1xf32>
    %163 = vector.broadcast %156 : vector<2x1x1xf32> to vector<2x8x3xf32>
    %164 = arith.subf %145, %163 : vector<2x8x3xf32>
    %cst_37 = arith.constant 9.99999974E-6 : f32
    %165 = vector.broadcast %cst_37 : f32 to vector<2x1x1xf32>
    %166 = arith.addf %162, %165 : vector<2x1x1xf32>
    %167 = math.rsqrt %166 : vector<2x1x1xf32>
    %168 = vector.broadcast %167 : vector<2x1x1xf32> to vector<2x8x3xf32>
    %169 = arith.mulf %164, %168 : vector<2x8x3xf32>
    %170 = vector.shape_cast %169 : vector<2x8x3xf32> to vector<16x3xf32>
    %171 = vector.extract_strided_slice %144 {offsets = [0, 0], sizes = [16, 3], strides = [1, 1]} : vector<16x6xf32> to vector<16x3xf32>
    %172 = arith.mulf %170, %171 : vector<16x3xf32>
    %173 = vector.extract_strided_slice %144 {offsets = [0, 3], sizes = [16, 3], strides = [1, 1]} : vector<16x6xf32> to vector<16x3xf32>
    %174 = arith.addf %172, %173 : vector<16x3xf32>
    %c32 = arith.constant 32 : index
    %c0_38 = arith.constant 0 : index
    %175 = vector.load %arg2[%c32, %c0_38] : memref<152x18xf32, #tpu.memory_space<vmem>>, vector<4x3xf32>
    %176 = vector.extract_strided_slice %175 {offsets = [0, 0], sizes = [3, 3], strides = [1, 1]} : vector<4x3xf32> to vector<3x3xf32>
    %177 = vector.extract_strided_slice %174 {offsets = [0, 0], sizes = [16, 1], strides = [1, 1]} : vector<16x3xf32> to vector<16x1xf32>
    %178 = vector.extract_strided_slice %176 {offsets = [0, 0], sizes = [1, 3], strides = [1, 1]} : vector<3x3xf32> to vector<1x3xf32>
    %179 = vector.broadcast %177 : vector<16x1xf32> to vector<16x3xf32>
    %180 = vector.broadcast %178 : vector<1x3xf32> to vector<16x3xf32>
    %181 = arith.mulf %179, %180 : vector<16x3xf32>
    %182 = vector.extract_strided_slice %174 {offsets = [0, 1], sizes = [16, 1], strides = [1, 1]} : vector<16x3xf32> to vector<16x1xf32>
    %183 = vector.extract_strided_slice %176 {offsets = [1, 0], sizes = [1, 3], strides = [1, 1]} : vector<3x3xf32> to vector<1x3xf32>
    %184 = vector.broadcast %182 : vector<16x1xf32> to vector<16x3xf32>
    %185 = vector.broadcast %183 : vector<1x3xf32> to vector<16x3xf32>
    %186 = arith.mulf %184, %185 : vector<16x3xf32>
    %187 = arith.addf %181, %186 : vector<16x3xf32>
    %188 = vector.extract_strided_slice %174 {offsets = [0, 2], sizes = [16, 1], strides = [1, 1]} : vector<16x3xf32> to vector<16x1xf32>
    %189 = vector.extract_strided_slice %176 {offsets = [2, 0], sizes = [1, 3], strides = [1, 1]} : vector<3x3xf32> to vector<1x3xf32>
    %190 = vector.broadcast %188 : vector<16x1xf32> to vector<16x3xf32>
    %191 = vector.broadcast %189 : vector<1x3xf32> to vector<16x3xf32>
    %192 = arith.mulf %190, %191 : vector<16x3xf32>
    %193 = arith.addf %187, %192 : vector<16x3xf32>
    %194 = vector.extract_strided_slice %175 {offsets = [3, 0], sizes = [1, 3], strides = [1, 1]} : vector<4x3xf32> to vector<1x3xf32>
    %195 = vector.broadcast %194 : vector<1x3xf32> to vector<16x3xf32>
    %196 = arith.addf %193, %195 : vector<16x3xf32>
    %cst_39 = arith.constant 0.000000e+00 : f32
    %197 = vector.broadcast %cst_39 : f32 to vector<16x3xf32>
    %198 = arith.maximumf %196, %197 : vector<16x3xf32>
    %199 = arith.addf %198, %174 : vector<16x3xf32>
    %c80 = arith.constant 80 : index
    %c0_40 = arith.constant 0 : index
    %200 = vector.load %arg2[%c80, %c0_40] : memref<152x18xf32, #tpu.memory_space<vmem>>, vector<16x6xf32>
    %201 = vector.shape_cast %199 : vector<16x3xf32> to vector<2x8x3xf32>
    %cst_41 = arith.constant dense<0.000000e+00> : vector<2x8xf32>
    %202 = vector.multi_reduction <add>, %201, %cst_41 [2] : vector<2x8x3xf32> to vector<2x8xf32>
    %203 = vector.shape_cast %202 : vector<2x8xf32> to vector<2x8x1xf32>
    %cst_42 = arith.constant dense<0.000000e+00> : vector<2x1xf32>
    %204 = vector.multi_reduction <add>, %203, %cst_42 [1] : vector<2x8x1xf32> to vector<2x1xf32>
    %205 = vector.shape_cast %204 : vector<2x1xf32> to vector<2x1x1xf32>
    %206 = arith.mulf %201, %201 : vector<2x8x3xf32>
    %cst_43 = arith.constant dense<0.000000e+00> : vector<2x8xf32>
    %207 = vector.multi_reduction <add>, %206, %cst_43 [2] : vector<2x8x3xf32> to vector<2x8xf32>
    %208 = vector.shape_cast %207 : vector<2x8xf32> to vector<2x8x1xf32>
    %cst_44 = arith.constant dense<0.000000e+00> : vector<2x1xf32>
    %209 = vector.multi_reduction <add>, %208, %cst_44 [1] : vector<2x8x1xf32> to vector<2x1xf32>
    %210 = vector.shape_cast %209 : vector<2x1xf32> to vector<2x1x1xf32>
    %cst_45 = arith.constant 0.0416666679 : f32
    %211 = vector.broadcast %cst_45 : f32 to vector<2x1x1xf32>
    %212 = arith.mulf %205, %211 : vector<2x1x1xf32>
    %cst_46 = arith.constant 0.0416666679 : f32
    %213 = vector.broadcast %cst_46 : f32 to vector<2x1x1xf32>
    %214 = arith.mulf %210, %213 : vector<2x1x1xf32>
    %215 = arith.mulf %212, %212 : vector<2x1x1xf32>
    %216 = arith.subf %214, %215 : vector<2x1x1xf32>
    %cst_47 = arith.constant 0.000000e+00 : f32
    %217 = vector.broadcast %cst_47 : f32 to vector<2x1x1xf32>
    %218 = arith.maximumf %216, %217 : vector<2x1x1xf32>
    %219 = vector.broadcast %212 : vector<2x1x1xf32> to vector<2x8x3xf32>
    %220 = arith.subf %201, %219 : vector<2x8x3xf32>
    %cst_48 = arith.constant 9.99999974E-6 : f32
    %221 = vector.broadcast %cst_48 : f32 to vector<2x1x1xf32>
    %222 = arith.addf %218, %221 : vector<2x1x1xf32>
    %223 = math.rsqrt %222 : vector<2x1x1xf32>
    %224 = vector.broadcast %223 : vector<2x1x1xf32> to vector<2x8x3xf32>
    %225 = arith.mulf %220, %224 : vector<2x8x3xf32>
    %226 = vector.shape_cast %225 : vector<2x8x3xf32> to vector<16x3xf32>
    %227 = vector.extract_strided_slice %200 {offsets = [0, 0], sizes = [16, 3], strides = [1, 1]} : vector<16x6xf32> to vector<16x3xf32>
    %228 = arith.mulf %226, %227 : vector<16x3xf32>
    %229 = vector.extract_strided_slice %200 {offsets = [0, 3], sizes = [16, 3], strides = [1, 1]} : vector<16x6xf32> to vector<16x3xf32>
    %230 = arith.addf %228, %229 : vector<16x3xf32>
    %c16 = arith.constant 16 : index
    %c0_49 = arith.constant 0 : index
    %231 = vector.load %arg2[%c16, %c0_49] : memref<152x18xf32, #tpu.memory_space<vmem>>, vector<3x18xf32>
    %232 = vector.extract_strided_slice %230 {offsets = [0, 0], sizes = [16, 1], strides = [1, 1]} : vector<16x3xf32> to vector<16x1xf32>
    %233 = vector.extract_strided_slice %231 {offsets = [0, 0], sizes = [1, 18], strides = [1, 1]} : vector<3x18xf32> to vector<1x18xf32>
    %234 = vector.broadcast %232 : vector<16x1xf32> to vector<16x18xf32>
    %235 = vector.broadcast %233 : vector<1x18xf32> to vector<16x18xf32>
    %236 = arith.mulf %234, %235 : vector<16x18xf32>
    %237 = vector.extract_strided_slice %230 {offsets = [0, 1], sizes = [16, 1], strides = [1, 1]} : vector<16x3xf32> to vector<16x1xf32>
    %238 = vector.extract_strided_slice %231 {offsets = [1, 0], sizes = [1, 18], strides = [1, 1]} : vector<3x18xf32> to vector<1x18xf32>
    %239 = vector.broadcast %237 : vector<16x1xf32> to vector<16x18xf32>
    %240 = vector.broadcast %238 : vector<1x18xf32> to vector<16x18xf32>
    %241 = arith.mulf %239, %240 : vector<16x18xf32>
    %242 = arith.addf %236, %241 : vector<16x18xf32>
    %243 = vector.extract_strided_slice %230 {offsets = [0, 2], sizes = [16, 1], strides = [1, 1]} : vector<16x3xf32> to vector<16x1xf32>
    %244 = vector.extract_strided_slice %231 {offsets = [2, 0], sizes = [1, 18], strides = [1, 1]} : vector<3x18xf32> to vector<1x18xf32>
    %245 = vector.broadcast %243 : vector<16x1xf32> to vector<16x18xf32>
    %246 = vector.broadcast %244 : vector<1x18xf32> to vector<16x18xf32>
    %247 = arith.mulf %245, %246 : vector<16x18xf32>
    %248 = arith.addf %242, %247 : vector<16x18xf32>
    %249 = vector.extract_strided_slice %248 {offsets = [0, 0], sizes = [16, 3], strides = [1, 1]} : vector<16x18xf32> to vector<16x3xf32>
    %250 = vector.extract_strided_slice %248 {offsets = [0, 3], sizes = [16, 3], strides = [1, 1]} : vector<16x18xf32> to vector<16x3xf32>
    %251 = vector.extract_strided_slice %248 {offsets = [0, 6], sizes = [16, 3], strides = [1, 1]} : vector<16x18xf32> to vector<16x3xf32>
    %252 = arith.truncf %249 : vector<16x3xf32> to vector<16x3xbf16>
    %253 = arith.truncf %250 : vector<16x3xf32> to vector<16x3xbf16>
    "tpu.trace_start"() <{level = 10 : i32, message = "nd,md->nm"}> : () -> ()
    %cst_50 = arith.constant dense<0.000000e+00> : vector<16x16xf32>
    %254 = tpu.matmul %252, %253, %cst_50 {dimension_numbers = #tpu.dot_dimension_numbers<[1], [1], [0], [0], [0, 0, 1, 0], [], []>} : vector<16x3xbf16>, vector<16x3xbf16>, vector<16x16xf32> -> vector<16x16xf32>
    "tpu.trace_stop"() : () -> ()
    %255 = arith.mulf %254, %2 : vector<16x16xf32>
    %256 = arith.addf %255, %4 : vector<16x16xf32>
    %257 = math.exp %256 : vector<16x16xf32>
    %cst_51 = arith.constant dense<0.000000e+00> : vector<16xf32>
    %258 = vector.multi_reduction <add>, %257, %cst_51 [1] : vector<16x16xf32> to vector<16xf32>
    %259 = vector.shape_cast %258 : vector<16xf32> to vector<16x1xf32>
    %260 = tpu.reciprocal %259 {approx = true} : vector<16x1xf32> -> vector<16x1xf32>
    %261 = vector.broadcast %260 : vector<16x1xf32> to vector<16x16xf32>
    %262 = arith.mulf %257, %261 : vector<16x16xf32>
    %263 = arith.truncf %262 : vector<16x16xf32> to vector<16x16xbf16>
    %264 = arith.truncf %251 : vector<16x3xf32> to vector<16x3xbf16>
    %cst_52 = arith.constant dense<0.000000e+00> : vector<16x3xf32>
    %265 = tpu.matmul %263, %264, %cst_52 {dimension_numbers = #tpu.dot_dimension_numbers<[1], [0], [0], [1], [0, 0, 1, 1], [], []>} : vector<16x16xbf16>, vector<16x3xbf16>, vector<16x3xf32> -> vector<16x3xf32>
    %266 = vector.extract_strided_slice %248 {offsets = [0, 9], sizes = [16, 3], strides = [1, 1]} : vector<16x18xf32> to vector<16x3xf32>
    %267 = vector.extract_strided_slice %248 {offsets = [0, 12], sizes = [16, 3], strides = [1, 1]} : vector<16x18xf32> to vector<16x3xf32>
    %268 = vector.extract_strided_slice %248 {offsets = [0, 15], sizes = [16, 3], strides = [1, 1]} : vector<16x18xf32> to vector<16x3xf32>
    %269 = arith.truncf %266 : vector<16x3xf32> to vector<16x3xbf16>
    %270 = arith.truncf %267 : vector<16x3xf32> to vector<16x3xbf16>
    "tpu.trace_start"() <{level = 10 : i32, message = "nd,md->nm"}> : () -> ()
    %cst_53 = arith.constant dense<0.000000e+00> : vector<16x16xf32>
    %271 = tpu.matmul %269, %270, %cst_53 {dimension_numbers = #tpu.dot_dimension_numbers<[1], [1], [0], [0], [0, 0, 1, 0], [], []>} : vector<16x3xbf16>, vector<16x3xbf16>, vector<16x16xf32> -> vector<16x16xf32>
    "tpu.trace_stop"() : () -> ()
    %272 = arith.mulf %271, %2 : vector<16x16xf32>
    %273 = arith.addf %272, %4 : vector<16x16xf32>
    %274 = math.exp %273 : vector<16x16xf32>
    %cst_54 = arith.constant dense<0.000000e+00> : vector<16xf32>
    %275 = vector.multi_reduction <add>, %274, %cst_54 [1] : vector<16x16xf32> to vector<16xf32>
    %276 = vector.shape_cast %275 : vector<16xf32> to vector<16x1xf32>
    %277 = tpu.reciprocal %276 {approx = true} : vector<16x1xf32> -> vector<16x1xf32>
    %278 = vector.broadcast %277 : vector<16x1xf32> to vector<16x16xf32>
    %279 = arith.mulf %274, %278 : vector<16x16xf32>
    %280 = arith.truncf %279 : vector<16x16xf32> to vector<16x16xbf16>
    %281 = arith.truncf %268 : vector<16x3xf32> to vector<16x3xbf16>
    %cst_55 = arith.constant dense<0.000000e+00> : vector<16x3xf32>
    %282 = tpu.matmul %280, %281, %cst_55 {dimension_numbers = #tpu.dot_dimension_numbers<[1], [0], [0], [1], [0, 0, 1, 1], [], []>} : vector<16x16xbf16>, vector<16x3xbf16>, vector<16x3xf32> -> vector<16x3xf32>
    %283 = arith.addf %265, %282 : vector<16x3xf32>
    %284 = arith.addf %283, %230 : vector<16x3xf32>
    %c96 = arith.constant 96 : index
    %c0_56 = arith.constant 0 : index
    %285 = vector.load %arg2[%c96, %c0_56] : memref<152x18xf32, #tpu.memory_space<vmem>>, vector<16x6xf32>
    %286 = vector.shape_cast %284 : vector<16x3xf32> to vector<2x8x3xf32>
    %cst_57 = arith.constant dense<0.000000e+00> : vector<2x8xf32>
    %287 = vector.multi_reduction <add>, %286, %cst_57 [2] : vector<2x8x3xf32> to vector<2x8xf32>
    %288 = vector.shape_cast %287 : vector<2x8xf32> to vector<2x8x1xf32>
    %cst_58 = arith.constant dense<0.000000e+00> : vector<2x1xf32>
    %289 = vector.multi_reduction <add>, %288, %cst_58 [1] : vector<2x8x1xf32> to vector<2x1xf32>
    %290 = vector.shape_cast %289 : vector<2x1xf32> to vector<2x1x1xf32>
    %291 = arith.mulf %286, %286 : vector<2x8x3xf32>
    %cst_59 = arith.constant dense<0.000000e+00> : vector<2x8xf32>
    %292 = vector.multi_reduction <add>, %291, %cst_59 [2] : vector<2x8x3xf32> to vector<2x8xf32>
    %293 = vector.shape_cast %292 : vector<2x8xf32> to vector<2x8x1xf32>
    %cst_60 = arith.constant dense<0.000000e+00> : vector<2x1xf32>
    %294 = vector.multi_reduction <add>, %293, %cst_60 [1] : vector<2x8x1xf32> to vector<2x1xf32>
    %295 = vector.shape_cast %294 : vector<2x1xf32> to vector<2x1x1xf32>
    %cst_61 = arith.constant 0.0416666679 : f32
    %296 = vector.broadcast %cst_61 : f32 to vector<2x1x1xf32>
    %297 = arith.mulf %290, %296 : vector<2x1x1xf32>
    %cst_62 = arith.constant 0.0416666679 : f32
    %298 = vector.broadcast %cst_62 : f32 to vector<2x1x1xf32>
    %299 = arith.mulf %295, %298 : vector<2x1x1xf32>
    %300 = arith.mulf %297, %297 : vector<2x1x1xf32>
    %301 = arith.subf %299, %300 : vector<2x1x1xf32>
    %cst_63 = arith.constant 0.000000e+00 : f32
    %302 = vector.broadcast %cst_63 : f32 to vector<2x1x1xf32>
    %303 = arith.maximumf %301, %302 : vector<2x1x1xf32>
    %304 = vector.broadcast %297 : vector<2x1x1xf32> to vector<2x8x3xf32>
    %305 = arith.subf %286, %304 : vector<2x8x3xf32>
    %cst_64 = arith.constant 9.99999974E-6 : f32
    %306 = vector.broadcast %cst_64 : f32 to vector<2x1x1xf32>
    %307 = arith.addf %303, %306 : vector<2x1x1xf32>
    %308 = math.rsqrt %307 : vector<2x1x1xf32>
    %309 = vector.broadcast %308 : vector<2x1x1xf32> to vector<2x8x3xf32>
    %310 = arith.mulf %305, %309 : vector<2x8x3xf32>
    %311 = vector.shape_cast %310 : vector<2x8x3xf32> to vector<16x3xf32>
    %312 = vector.extract_strided_slice %285 {offsets = [0, 0], sizes = [16, 3], strides = [1, 1]} : vector<16x6xf32> to vector<16x3xf32>
    %313 = arith.mulf %311, %312 : vector<16x3xf32>
    %314 = vector.extract_strided_slice %285 {offsets = [0, 3], sizes = [16, 3], strides = [1, 1]} : vector<16x6xf32> to vector<16x3xf32>
    %315 = arith.addf %313, %314 : vector<16x3xf32>
    %c24 = arith.constant 24 : index
    %c0_65 = arith.constant 0 : index
    %316 = vector.load %arg2[%c24, %c0_65] : memref<152x18xf32, #tpu.memory_space<vmem>>, vector<3x18xf32>
    %317 = vector.extract_strided_slice %315 {offsets = [0, 0], sizes = [16, 1], strides = [1, 1]} : vector<16x3xf32> to vector<16x1xf32>
    %318 = vector.extract_strided_slice %316 {offsets = [0, 0], sizes = [1, 18], strides = [1, 1]} : vector<3x18xf32> to vector<1x18xf32>
    %319 = vector.broadcast %317 : vector<16x1xf32> to vector<16x18xf32>
    %320 = vector.broadcast %318 : vector<1x18xf32> to vector<16x18xf32>
    %321 = arith.mulf %319, %320 : vector<16x18xf32>
    %322 = vector.extract_strided_slice %315 {offsets = [0, 1], sizes = [16, 1], strides = [1, 1]} : vector<16x3xf32> to vector<16x1xf32>
    %323 = vector.extract_strided_slice %316 {offsets = [1, 0], sizes = [1, 18], strides = [1, 1]} : vector<3x18xf32> to vector<1x18xf32>
    %324 = vector.broadcast %322 : vector<16x1xf32> to vector<16x18xf32>
    %325 = vector.broadcast %323 : vector<1x18xf32> to vector<16x18xf32>
    %326 = arith.mulf %324, %325 : vector<16x18xf32>
    %327 = arith.addf %321, %326 : vector<16x18xf32>
    %328 = vector.extract_strided_slice %315 {offsets = [0, 2], sizes = [16, 1], strides = [1, 1]} : vector<16x3xf32> to vector<16x1xf32>
    %329 = vector.extract_strided_slice %316 {offsets = [2, 0], sizes = [1, 18], strides = [1, 1]} : vector<3x18xf32> to vector<1x18xf32>
    %330 = vector.broadcast %328 : vector<16x1xf32> to vector<16x18xf32>
    %331 = vector.broadcast %329 : vector<1x18xf32> to vector<16x18xf32>
    %332 = arith.mulf %330, %331 : vector<16x18xf32>
    %333 = arith.addf %327, %332 : vector<16x18xf32>
    %334 = vector.extract_strided_slice %333 {offsets = [0, 0], sizes = [16, 3], strides = [1, 1]} : vector<16x18xf32> to vector<16x3xf32>
    %335 = vector.extract_strided_slice %333 {offsets = [0, 3], sizes = [16, 3], strides = [1, 1]} : vector<16x18xf32> to vector<16x3xf32>
    %336 = vector.extract_strided_slice %333 {offsets = [0, 6], sizes = [16, 3], strides = [1, 1]} : vector<16x18xf32> to vector<16x3xf32>
    %337 = arith.truncf %334 : vector<16x3xf32> to vector<16x3xbf16>
    %338 = arith.truncf %335 : vector<16x3xf32> to vector<16x3xbf16>
    "tpu.trace_start"() <{level = 10 : i32, message = "nd,md->nm"}> : () -> ()
    %cst_66 = arith.constant dense<0.000000e+00> : vector<16x16xf32>
    %339 = tpu.matmul %337, %338, %cst_66 {dimension_numbers = #tpu.dot_dimension_numbers<[1], [1], [0], [0], [0, 0, 1, 0], [], []>} : vector<16x3xbf16>, vector<16x3xbf16>, vector<16x16xf32> -> vector<16x16xf32>
    "tpu.trace_stop"() : () -> ()
    %340 = arith.mulf %339, %2 : vector<16x16xf32>
    %341 = arith.addf %340, %4 : vector<16x16xf32>
    %342 = math.exp %341 : vector<16x16xf32>
    %cst_67 = arith.constant dense<0.000000e+00> : vector<16xf32>
    %343 = vector.multi_reduction <add>, %342, %cst_67 [1] : vector<16x16xf32> to vector<16xf32>
    %344 = vector.shape_cast %343 : vector<16xf32> to vector<16x1xf32>
    %345 = tpu.reciprocal %344 {approx = true} : vector<16x1xf32> -> vector<16x1xf32>
    %346 = vector.broadcast %345 : vector<16x1xf32> to vector<16x16xf32>
    %347 = arith.mulf %342, %346 : vector<16x16xf32>
    %348 = arith.truncf %347 : vector<16x16xf32> to vector<16x16xbf16>
    %349 = arith.truncf %336 : vector<16x3xf32> to vector<16x3xbf16>
    %cst_68 = arith.constant dense<0.000000e+00> : vector<16x3xf32>
    %350 = tpu.matmul %348, %349, %cst_68 {dimension_numbers = #tpu.dot_dimension_numbers<[1], [0], [0], [1], [0, 0, 1, 1], [], []>} : vector<16x16xbf16>, vector<16x3xbf16>, vector<16x3xf32> -> vector<16x3xf32>
    %351 = vector.extract_strided_slice %333 {offsets = [0, 9], sizes = [16, 3], strides = [1, 1]} : vector<16x18xf32> to vector<16x3xf32>
    %352 = vector.extract_strided_slice %333 {offsets = [0, 12], sizes = [16, 3], strides = [1, 1]} : vector<16x18xf32> to vector<16x3xf32>
    %353 = vector.extract_strided_slice %333 {offsets = [0, 15], sizes = [16, 3], strides = [1, 1]} : vector<16x18xf32> to vector<16x3xf32>
    %354 = arith.truncf %351 : vector<16x3xf32> to vector<16x3xbf16>
    %355 = arith.truncf %352 : vector<16x3xf32> to vector<16x3xbf16>
    "tpu.trace_start"() <{level = 10 : i32, message = "nd,md->nm"}> : () -> ()
    %cst_69 = arith.constant dense<0.000000e+00> : vector<16x16xf32>
    %356 = tpu.matmul %354, %355, %cst_69 {dimension_numbers = #tpu.dot_dimension_numbers<[1], [1], [0], [0], [0, 0, 1, 0], [], []>} : vector<16x3xbf16>, vector<16x3xbf16>, vector<16x16xf32> -> vector<16x16xf32>
    "tpu.trace_stop"() : () -> ()
    %357 = arith.mulf %356, %2 : vector<16x16xf32>
    %358 = arith.addf %357, %4 : vector<16x16xf32>
    %359 = math.exp %358 : vector<16x16xf32>
    %cst_70 = arith.constant dense<0.000000e+00> : vector<16xf32>
    %360 = vector.multi_reduction <add>, %359, %cst_70 [1] : vector<16x16xf32> to vector<16xf32>
    %361 = vector.shape_cast %360 : vector<16xf32> to vector<16x1xf32>
    %362 = tpu.reciprocal %361 {approx = true} : vector<16x1xf32> -> vector<16x1xf32>
    %363 = vector.broadcast %362 : vector<16x1xf32> to vector<16x16xf32>
    %364 = arith.mulf %359, %363 : vector<16x16xf32>
    %365 = arith.truncf %364 : vector<16x16xf32> to vector<16x16xbf16>
    %366 = arith.truncf %353 : vector<16x3xf32> to vector<16x3xbf16>
    %cst_71 = arith.constant dense<0.000000e+00> : vector<16x3xf32>
    %367 = tpu.matmul %365, %366, %cst_71 {dimension_numbers = #tpu.dot_dimension_numbers<[1], [0], [0], [1], [0, 0, 1, 1], [], []>} : vector<16x16xbf16>, vector<16x3xbf16>, vector<16x3xf32> -> vector<16x3xf32>
    %368 = arith.addf %350, %367 : vector<16x3xf32>
    %369 = arith.addf %368, %315 : vector<16x3xf32>
    %c112 = arith.constant 112 : index
    %c0_72 = arith.constant 0 : index
    %370 = vector.load %arg2[%c112, %c0_72] : memref<152x18xf32, #tpu.memory_space<vmem>>, vector<16x6xf32>
    %371 = vector.shape_cast %369 : vector<16x3xf32> to vector<2x8x3xf32>
    %cst_73 = arith.constant dense<0.000000e+00> : vector<2x8xf32>
    %372 = vector.multi_reduction <add>, %371, %cst_73 [2] : vector<2x8x3xf32> to vector<2x8xf32>
    %373 = vector.shape_cast %372 : vector<2x8xf32> to vector<2x8x1xf32>
    %cst_74 = arith.constant dense<0.000000e+00> : vector<2x1xf32>
    %374 = vector.multi_reduction <add>, %373, %cst_74 [1] : vector<2x8x1xf32> to vector<2x1xf32>
    %375 = vector.shape_cast %374 : vector<2x1xf32> to vector<2x1x1xf32>
    %376 = arith.mulf %371, %371 : vector<2x8x3xf32>
    %cst_75 = arith.constant dense<0.000000e+00> : vector<2x8xf32>
    %377 = vector.multi_reduction <add>, %376, %cst_75 [2] : vector<2x8x3xf32> to vector<2x8xf32>
    %378 = vector.shape_cast %377 : vector<2x8xf32> to vector<2x8x1xf32>
    %cst_76 = arith.constant dense<0.000000e+00> : vector<2x1xf32>
    %379 = vector.multi_reduction <add>, %378, %cst_76 [1] : vector<2x8x1xf32> to vector<2x1xf32>
    %380 = vector.shape_cast %379 : vector<2x1xf32> to vector<2x1x1xf32>
    %cst_77 = arith.constant 0.0416666679 : f32
    %381 = vector.broadcast %cst_77 : f32 to vector<2x1x1xf32>
    %382 = arith.mulf %375, %381 : vector<2x1x1xf32>
    %cst_78 = arith.constant 0.0416666679 : f32
    %383 = vector.broadcast %cst_78 : f32 to vector<2x1x1xf32>
    %384 = arith.mulf %380, %383 : vector<2x1x1xf32>
    %385 = arith.mulf %382, %382 : vector<2x1x1xf32>
    %386 = arith.subf %384, %385 : vector<2x1x1xf32>
    %cst_79 = arith.constant 0.000000e+00 : f32
    %387 = vector.broadcast %cst_79 : f32 to vector<2x1x1xf32>
    %388 = arith.maximumf %386, %387 : vector<2x1x1xf32>
    %389 = vector.broadcast %382 : vector<2x1x1xf32> to vector<2x8x3xf32>
    %390 = arith.subf %371, %389 : vector<2x8x3xf32>
    %cst_80 = arith.constant 9.99999974E-6 : f32
    %391 = vector.broadcast %cst_80 : f32 to vector<2x1x1xf32>
    %392 = arith.addf %388, %391 : vector<2x1x1xf32>
    %393 = math.rsqrt %392 : vector<2x1x1xf32>
    %394 = vector.broadcast %393 : vector<2x1x1xf32> to vector<2x8x3xf32>
    %395 = arith.mulf %390, %394 : vector<2x8x3xf32>
    %396 = vector.shape_cast %395 : vector<2x8x3xf32> to vector<16x3xf32>
    %397 = vector.extract_strided_slice %370 {offsets = [0, 0], sizes = [16, 3], strides = [1, 1]} : vector<16x6xf32> to vector<16x3xf32>
    %398 = arith.mulf %396, %397 : vector<16x3xf32>
    %399 = vector.extract_strided_slice %370 {offsets = [0, 3], sizes = [16, 3], strides = [1, 1]} : vector<16x6xf32> to vector<16x3xf32>
    %400 = arith.addf %398, %399 : vector<16x3xf32>
    %c40 = arith.constant 40 : index
    %c0_81 = arith.constant 0 : index
    %401 = vector.load %arg2[%c40, %c0_81] : memref<152x18xf32, #tpu.memory_space<vmem>>, vector<4x3xf32>
    %402 = vector.extract_strided_slice %401 {offsets = [0, 0], sizes = [3, 3], strides = [1, 1]} : vector<4x3xf32> to vector<3x3xf32>
    %403 = vector.extract_strided_slice %400 {offsets = [0, 0], sizes = [16, 1], strides = [1, 1]} : vector<16x3xf32> to vector<16x1xf32>
    %404 = vector.extract_strided_slice %402 {offsets = [0, 0], sizes = [1, 3], strides = [1, 1]} : vector<3x3xf32> to vector<1x3xf32>
    %405 = vector.broadcast %403 : vector<16x1xf32> to vector<16x3xf32>
    %406 = vector.broadcast %404 : vector<1x3xf32> to vector<16x3xf32>
    %407 = arith.mulf %405, %406 : vector<16x3xf32>
    %408 = vector.extract_strided_slice %400 {offsets = [0, 1], sizes = [16, 1], strides = [1, 1]} : vector<16x3xf32> to vector<16x1xf32>
    %409 = vector.extract_strided_slice %402 {offsets = [1, 0], sizes = [1, 3], strides = [1, 1]} : vector<3x3xf32> to vector<1x3xf32>
    %410 = vector.broadcast %408 : vector<16x1xf32> to vector<16x3xf32>
    %411 = vector.broadcast %409 : vector<1x3xf32> to vector<16x3xf32>
    %412 = arith.mulf %410, %411 : vector<16x3xf32>
    %413 = arith.addf %407, %412 : vector<16x3xf32>
    %414 = vector.extract_strided_slice %400 {offsets = [0, 2], sizes = [16, 1], strides = [1, 1]} : vector<16x3xf32> to vector<16x1xf32>
    %415 = vector.extract_strided_slice %402 {offsets = [2, 0], sizes = [1, 3], strides = [1, 1]} : vector<3x3xf32> to vector<1x3xf32>
    %416 = vector.broadcast %414 : vector<16x1xf32> to vector<16x3xf32>
    %417 = vector.broadcast %415 : vector<1x3xf32> to vector<16x3xf32>
    %418 = arith.mulf %416, %417 : vector<16x3xf32>
    %419 = arith.addf %413, %418 : vector<16x3xf32>
    %420 = vector.extract_strided_slice %401 {offsets = [3, 0], sizes = [1, 3], strides = [1, 1]} : vector<4x3xf32> to vector<1x3xf32>
    %421 = vector.broadcast %420 : vector<1x3xf32> to vector<16x3xf32>
    %422 = arith.addf %419, %421 : vector<16x3xf32>
    %cst_82 = arith.constant 0.000000e+00 : f32
    %423 = vector.broadcast %cst_82 : f32 to vector<16x3xf32>
    %424 = arith.maximumf %422, %423 : vector<16x3xf32>
    %425 = arith.addf %424, %400 : vector<16x3xf32>
    %c128 = arith.constant 128 : index
    %c0_83 = arith.constant 0 : index
    %426 = vector.load %arg2[%c128, %c0_83] : memref<152x18xf32, #tpu.memory_space<vmem>>, vector<16x6xf32>
    %427 = vector.shape_cast %425 : vector<16x3xf32> to vector<2x8x3xf32>
    %cst_84 = arith.constant dense<0.000000e+00> : vector<2x8xf32>
    %428 = vector.multi_reduction <add>, %427, %cst_84 [2] : vector<2x8x3xf32> to vector<2x8xf32>
    %429 = vector.shape_cast %428 : vector<2x8xf32> to vector<2x8x1xf32>
    %cst_85 = arith.constant dense<0.000000e+00> : vector<2x1xf32>
    %430 = vector.multi_reduction <add>, %429, %cst_85 [1] : vector<2x8x1xf32> to vector<2x1xf32>
    %431 = vector.shape_cast %430 : vector<2x1xf32> to vector<2x1x1xf32>
    %432 = arith.mulf %427, %427 : vector<2x8x3xf32>
    %cst_86 = arith.constant dense<0.000000e+00> : vector<2x8xf32>
    %433 = vector.multi_reduction <add>, %432, %cst_86 [2] : vector<2x8x3xf32> to vector<2x8xf32>
    %434 = vector.shape_cast %433 : vector<2x8xf32> to vector<2x8x1xf32>
    %cst_87 = arith.constant dense<0.000000e+00> : vector<2x1xf32>
    %435 = vector.multi_reduction <add>, %434, %cst_87 [1] : vector<2x8x1xf32> to vector<2x1xf32>
    %436 = vector.shape_cast %435 : vector<2x1xf32> to vector<2x1x1xf32>
    %cst_88 = arith.constant 0.0416666679 : f32
    %437 = vector.broadcast %cst_88 : f32 to vector<2x1x1xf32>
    %438 = arith.mulf %431, %437 : vector<2x1x1xf32>
    %cst_89 = arith.constant 0.0416666679 : f32
    %439 = vector.broadcast %cst_89 : f32 to vector<2x1x1xf32>
    %440 = arith.mulf %436, %439 : vector<2x1x1xf32>
    %441 = arith.mulf %438, %438 : vector<2x1x1xf32>
    %442 = arith.subf %440, %441 : vector<2x1x1xf32>
    %cst_90 = arith.constant 0.000000e+00 : f32
    %443 = vector.broadcast %cst_90 : f32 to vector<2x1x1xf32>
    %444 = arith.maximumf %442, %443 : vector<2x1x1xf32>
    %445 = vector.broadcast %438 : vector<2x1x1xf32> to vector<2x8x3xf32>
    %446 = arith.subf %427, %445 : vector<2x8x3xf32>
    %cst_91 = arith.constant 9.99999974E-6 : f32
    %447 = vector.broadcast %cst_91 : f32 to vector<2x1x1xf32>
    %448 = arith.addf %444, %447 : vector<2x1x1xf32>
    %449 = math.rsqrt %448 : vector<2x1x1xf32>
    %450 = vector.broadcast %449 : vector<2x1x1xf32> to vector<2x8x3xf32>
    %451 = arith.mulf %446, %450 : vector<2x8x3xf32>
    %452 = vector.shape_cast %451 : vector<2x8x3xf32> to vector<16x3xf32>
    %453 = vector.extract_strided_slice %426 {offsets = [0, 0], sizes = [16, 3], strides = [1, 1]} : vector<16x6xf32> to vector<16x3xf32>
    %454 = arith.mulf %452, %453 : vector<16x3xf32>
    %455 = vector.extract_strided_slice %426 {offsets = [0, 3], sizes = [16, 3], strides = [1, 1]} : vector<16x6xf32> to vector<16x3xf32>
    %456 = arith.addf %454, %455 : vector<16x3xf32>
    %c144 = arith.constant 144 : index
    %c0_92 = arith.constant 0 : index
    %457 = vector.load %arg2[%c144, %c0_92] : memref<152x18xf32, #tpu.memory_space<vmem>>, vector<4x1xf32>
    %458 = vector.extract_strided_slice %457 {offsets = [0, 0], sizes = [3, 1], strides = [1, 1]} : vector<4x1xf32> to vector<3x1xf32>
    %459 = vector.extract_strided_slice %456 {offsets = [0, 0], sizes = [16, 1], strides = [1, 1]} : vector<16x3xf32> to vector<16x1xf32>
    %460 = vector.extract_strided_slice %458 {offsets = [0, 0], sizes = [1, 1], strides = [1, 1]} : vector<3x1xf32> to vector<1x1xf32>
    %461 = vector.broadcast %460 : vector<1x1xf32> to vector<16x1xf32>
    %462 = arith.mulf %459, %461 : vector<16x1xf32>
    %463 = vector.extract_strided_slice %456 {offsets = [0, 1], sizes = [16, 1], strides = [1, 1]} : vector<16x3xf32> to vector<16x1xf32>
    %464 = vector.extract_strided_slice %458 {offsets = [1, 0], sizes = [1, 1], strides = [1, 1]} : vector<3x1xf32> to vector<1x1xf32>
    %465 = vector.broadcast %464 : vector<1x1xf32> to vector<16x1xf32>
    %466 = arith.mulf %463, %465 : vector<16x1xf32>
    %467 = arith.addf %462, %466 : vector<16x1xf32>
    %468 = vector.extract_strided_slice %456 {offsets = [0, 2], sizes = [16, 1], strides = [1, 1]} : vector<16x3xf32> to vector<16x1xf32>
    %469 = vector.extract_strided_slice %458 {offsets = [2, 0], sizes = [1, 1], strides = [1, 1]} : vector<3x1xf32> to vector<1x1xf32>
    %470 = vector.broadcast %469 : vector<1x1xf32> to vector<16x1xf32>
    %471 = arith.mulf %468, %470 : vector<16x1xf32>
    %472 = arith.addf %467, %471 : vector<16x1xf32>
    %473 = vector.extract_strided_slice %457 {offsets = [3, 0], sizes = [1, 1], strides = [1, 1]} : vector<4x1xf32> to vector<1x1xf32>
    %474 = vector.broadcast %473 : vector<1x1xf32> to vector<16x1xf32>
    %475 = arith.addf %472, %474 : vector<16x1xf32>
    %c0_93 = arith.constant 0 : index
    %c0_94 = arith.constant 0 : index
    %476 = vector.load %arg3[%c0_93, %c0_94] : memref<16x1xf32, #tpu.memory_space<vmem>>, vector<16x1xf32>
    tpu.vector_store %arg3[%c0_93, %c0_94], %475 {strides = array<i32>} : memref<16x1xf32, #tpu.memory_space<vmem>>, vector<16x1xf32>,
    return
  }
}

</mosaic_0001>

<bundles_post_ra>
// kernel: tpu_custom_call.1
= control target key start
LH: loop header
LB: loop body
LE: loop exit
PB: predicated region body
PF: predicated region fallthrough
CT: control target
= control target key end

     0   :  { %v2043_v0 = vmov 1   ;;  %v2044_v1 = vmov 0   ;;  %v2045_v4 = vmov 2   ;;  %v33_v5 = vlaneseq  ;;  %s2048_s17 = smov 116   ;;  %s2049_s18 = smov 125   ;;  %s2529_s0 = inlined_call_operand.vmem [shape: f32[16,3], index: 0, kind: input, shape index: {}]   ;;  %s2530_s2 = inlined_call_operand.vmem [shape: f32[152,18], index: 2, kind: input, shape index: {}]   ;;  %s2531_s1 = inlined_call_operand.vmem [shape: f32[2,16,16], index: 1, kind: input, shape index: {}]   ;;  %s2532_s3 = inlined_call_operand.vmem [shape: f32[16,1], index: 3, kind: output, shape index: {}]  }
   0x1   :  { %1923 = vset.pattern.permute.xlu1 %v2043_v0  ;;  %1922 = vset.pattern.permute.xlu0 %v2044_v1  ;;  %v2082_v2 = vld [vmem:[%s2529_s0] sm:$0xff]  ;;  %v2089_v3 = vld [vmem:[%s2529_s0 + $0x8] sm:$0xff]  ;;  %v2046_v15 = vmov 0.0   ;;  %vm2047_vm0 = vmmov 0   ;;  %s2050_s19 = smov 119   ;;  %vm75_vm1 = vcmask 23552  }
   0x2   :  { %40 = vperm.xlu1 %1923, %v2082_v2   ;;  %25 = vperm.xlu0 %1922, %v2082_v2   ;;  %v2099_v6 = vshrl.u32 %v33_v5, 7  ;;  %v22_v8 = vld [vmem:[%s2530_s2] sm:$0x7]  ;;  %v2149_v38 = vld [vmem:[%s2531_s1 + $0x10] sm:$0xff]  ;;  %v2156_v45 = vld [vmem:[%s2531_s1 + $0x8] sm:$0xff]  ;;  %vm131_vm2 = vcmask 130048  }
   0x3   :  { %1812 = vmatprep.subr.bf16.mxu0 %v2046_v15  ;;  %1818 = vmatprep.subr.bf16.mxu1 %v2046_v15  ;;  %v2144_v37 = vld [vmem:[%s2531_s1] sm:$0xff]  ;;  %v2163_v48 = vld [vmem:[%s2531_s1 + $0x18] sm:$0xff]  ;;  %s2051_s28 = smov 113   ;;  %s2052_s29 = smov 122   ;;  %vm1755_vm3 = vcmask 7168  }
   0x4   :  { %v2102_v7 = vsub.s32 1, %v2099_v6  ;;  %v2108_v9 = vsub.s32 0, %v2099_v6  ;;  %v2112_v13 = vsub.s32 2, %v2099_v6  ;;  %1814 = vmatprep.mubr.msk.bf16.mxu0 %vm2047_vm0, %v2046_v15  ;;  %1820 = vmatprep.mubr.msk.bf16.mxu1 %vm2047_vm0, %v2046_v15  ;;  %s2053_s21 = smov 1   ;;  %s2054_s22 = smov 2  }
   0x6   :  { %44 = vperm.xlu1 %1923, %v2089_v3   ;;  %30 = vperm.xlu0 %1922, %v2089_v3   ;;  %v50_v12 = vrot.slane %v22_v8, %v2102_v7  ;;  %v36_v14 = vrot.slane %v22_v8, %v2108_v9  ;;  %v66_v19 = vrot.slane %v22_v8, %v2112_v13 }
   0xa   :  { %1925 = vset.pattern.permute.xlu1 %v2045_v4  ;;  %1924 = vset.pattern.permute.xlu0 %v2045_v4 }
   0xb   :  { %60 = vperm.xlu1 %1925, %v2089_v3   ;;  %56 = vperm.xlu0 %1924, %v2082_v2  }
   0xf   :  { %1926 = vset.pattern.permute.xlu1 %v2044_v1  ;;  %1927 = vset.pattern.permute.xlu0 %v2043_v0 }
  0x7d   :  { %v41_v10 = vpop.permute.xlu1 %40  ;;  %v26_v11 = vpop.permute.xlu0 %25 }
  0x7e   :  { %v51_v18 = vmul.f32 %v50_v12, %v41_v10  ;;  %v37_v20 = vmul.f32 %v36_v14, %v26_v11 }
  0x80   :  { %v53_v25 = vadd.f32 %v51_v18, %v37_v20 }
  0x81   :  { %v45_v16 = vpop.permute.xlu1 %44  ;;  %v31_v17 = vpop.permute.xlu0 %30 }
  0x82   :  { %v52_v21 = vmul.f32 %v50_v12, %v45_v16  ;;  %v38_v22 = vmul.f32 %v36_v14, %v31_v17 }
  0x84   :  { %v54_v26 = vadd.f32 %v52_v21, %v38_v22 }
  0x86   :  { %v61_v23 = vpop.permute.xlu1 %60  ;;  %v57_v24 = vpop.permute.xlu0 %56 }
  0x87   :  { %v68_v27 = vmul.f32 %v66_v19, %v61_v23  ;;  %v67_v28 = vmul.f32 %v66_v19, %v57_v24 }
  0x89   :  { %v70_v29 = vadd.f32 %v68_v27, %v54_v26  ;;  %v69_v30 = vadd.f32 %v67_v28, %v53_v25 }
  0x8b   :  { %v2122_v31 = vpack.c.bf16 %v70_v29, %v69_v30 }
  0x8d   :  { %145 = vrot.lane.b32.xlu0 %v2122_v31, %s2048_s17  ;;  %73 = vrot.lane.b32.xlu1 %v2122_v31, %s2049_s18 }
  0x91   :  { %143 = vrot.lane.b32.xlu1 %v2122_v31, %s2050_s19 }
  0xff   :  { %v146_v32 = vpop.permute.xlu0 %145  ;;  %v74_v33 = vpop.permute.xlu1 %73 }
 0x100   :  { %v80_v34 = vsel %vm75_vm1, %v74_v33, 0  ;;  %v151_v35 = vsel %vm75_vm1, %v146_v32, 0 }
 0x101   :  { %1813 = vmatpush3.bf16.xpose.msra.mxu0 %v80_v34  ;;  %1819 = vmatpush3.bf16.xpose.msra.mxu1 %v151_v35 }
 0x102   :  { %1824 = vmatprep.subr.bf16.mxu0 %v2046_v15  ;;  %1830 = vmatprep.subr.bf16.mxu1 %v2046_v15 }
 0x103   :  { %v144_v36 = vpop.permute.xlu1 %143 }
 0x108   :  { %1815 = vmatmul.mubr.msk.bf16.vlgmr.msra.gmra.mxu0 %vm75_vm1, %v2122_v31  ;;  %1821 = vmatmul.mubr.msk.bf16.vlgmr.msra.gmra.mxu1 %vm75_vm1, %v144_v36 }
 0x109   :  { %1832 = vmatprep.mubr.msk.bf16.mxu1 %vm2047_vm0, %v2046_v15  ;;  %1826 = vmatprep.mubr.msk.bf16.mxu0 %vm2047_vm0, %v2046_v15 }
 0x1c8   :  { %v116_v39 = vpop.f32.mrf.mxu0  ;;  %v187_v40 = vpop.f32.mrf.mxu1 }
 0x1c9   :  { %v123_v41 = vmul.f32 %v116_v39, %v2144_v37  ;;  %v194_v42 = vmul.f32 %v187_v40, %v2144_v37 }
 0x1ca   :  { %v1816_v43 = vpop.f32.mrf.mxu0  ;;  %v1822_v44 = vpop.f32.mrf.mxu1 }
 0x1cb   :  { %v125_v46 = vadd.f32 %v2149_v38, %v123_v41  ;;  %v196_v47 = vadd.f32 %v2149_v38, %v194_v42 }
 0x1cc   :  { %v119_v49 = vpop.f32.mrf.mxu0  ;;  %v190_v50 = vpop.f32.mrf.mxu1 }
 0x1cd   :  { %v127_v51 = vmul.f32 1.442695, %v125_v46  ;;  %v198_v52 = vmul.f32 1.442695, %v196_v47  ;;  %v124_v53 = vmul.f32 %v119_v49, %v2156_v45  ;;  %v195_v54 = vmul.f32 %v190_v50, %v2156_v45 }
 0x1ce   :  { %v1817_v55 = vpop.f32.mrf.mxu0  ;;  %v1823_v56 = vpop.f32.mrf.mxu1 }
 0x1cf   :  { %1951 = vpow2.f32 %v127_v51  ;;  %v126_v57 = vadd.f32 %v2163_v48, %v124_v53  ;;  %v197_v58 = vadd.f32 %v2163_v48, %v195_v54 }
 0x1d0   :  { %1953 = vpow2.f32 %v198_v52  ;;  %v309_v52 = vld [vmem:[%s2530_s2 + $0x30] sm:$0xff] }
 0x1d1   :  { %v129_v59 = vmul.f32 1.442695, %v126_v57  ;;  %v200_v60 = vmul.f32 1.442695, %v197_v58 }
 0x1d3   :  { %1955 = vpow2.f32 %v129_v59 }
 0x1d4   :  { %1957 = vpow2.f32 %v200_v60 }
 0x1dc   :  { %v1952_v61 = vpop.eup %1951 }
 0x1dd   :  { %v132_v62 = vsel %vm131_vm2, %v1952_v61, 0.0  ;;  %v1954_v63 = vpop.eup %1953 }
 0x1de   :  { %133 = vadd.xlane.f32.xlu0 %v132_v62  ;;  %v202_v10 = vsel %vm131_vm2, %v1954_v63, 0.0 }
 0x1e0   :  { %v1956_v5 = vpop.eup %1955 }
 0x1e1   :  { %v135_v8 = vsel %vm131_vm2, %v1956_v5, 0.0  ;;  %v1958_v11 = vpop.eup %1957 }
 0x1e2   :  { %136 = vadd.xlane.f32.xlu1 %v135_v8  ;;  %203 = vadd.xlane.f32.xlu0 %v202_v10  ;;  %v205_v12 = vsel %vm131_vm2, %v1958_v11, 0.0 }
 0x1e6   :  { %206 = vadd.xlane.f32.xlu0 %v205_v12 }
 0x1f3   :  { %213 = vrot.lane.b32.xlu1 %v2122_v31, %s2051_s28 }
 0x1fc   :  { %260 = vrot.lane.b32.xlu0 %v2122_v31, %s2052_s29 }
 0x267   :  { %v134_v14 = vpop.xlane.xlu0 %133 }
 0x268   :  { %1959 = vrcp.f32 %v134_v14 }
 0x26b   :  { %v204_v16 = vpop.xlane.xlu0 %203  ;;  %v137_v17 = vpop.xlane.xlu1 %136 }
 0x26c   :  { %1961 = vrcp.f32 %v137_v17 }
 0x26d   :  { %1963 = vrcp.f32 %v204_v16 }
 0x26f   :  { %v207_v18 = vpop.xlane.xlu0 %206  ;;  %v214_v19 = vpop.permute.xlu1 %213 }
 0x270   :  { %1965 = vrcp.f32 %v207_v18  ;;  %1825 = vmatpush3.bf16.msra.mxu0 %v214_v19 }
 0x271   :  { %1836 = vmatprep.subr.bf16.mxu0 %v2046_v15 }
 0x273   :  { %v261_v20 = vpop.permute.xlu0 %260 }
 0x274   :  { %1831 = vmatpush3.bf16.msra.mxu1 %v261_v20 }
 0x275   :  { %1842 = vmatprep.subr.bf16.mxu1 %v2046_v15  ;;  %v1960_v21 = vpop.eup %1959 }
 0x276   :  { %v140_v24 = vmul.f32 %v1960_v21, %v1952_v61 }
 0x279   :  { %v1962_v22 = vpop.eup %1961 }
 0x27a   :  { %v1964_v23 = vpop.eup %1963  ;;  %v141_v25 = vmul.f32 %v1962_v22, %v1956_v5 }
 0x27b   :  { %v210_v28 = vmul.f32 %v1964_v23, %v1954_v63 }
 0x27c   :  { %v142_v27 = vpack.c.bf16 %v141_v25, %v140_v24 }
 0x27d   :  { %v1966_v26 = vpop.eup %1965 }
 0x27e   :  { %v211_v29 = vmul.f32 %v1966_v26, %v1958_v11  ;;  %1833 = vmatmul.mubr.msk.bf16.vlgmr.msra.gmra.mxu1 %vm131_vm2, %v142_v27 }
 0x27f   :  { %1844 = vmatprep.mubr.msk.bf16.mxu1 %vm2047_vm0, %v2046_v15 }
 0x280   :  { %v212_v30 = vpack.c.bf16 %v211_v29, %v210_v28 }
 0x282   :  { %1827 = vmatmul.mubr.msk.bf16.vlgmr.msra.gmra.mxu0 %vm131_vm2, %v212_v30 }
 0x283   :  { %1838 = vmatprep.mubr.msk.bf16.mxu0 %vm2047_vm0, %v2046_v15 }
 0x33e   :  { %v300_v31 = vpop.f32.mrf.mxu1 }
 0x340   :  { %v1834_v32 = vpop.f32.mrf.mxu1 }
 0x342   :  { %v253_v33 = vpop.f32.mrf.mxu0  ;;  %v303_v35 = vpop.f32.mrf.mxu1 }
 0x343   :  { %v301_v34 = vadd.f32 %v300_v31, %v253_v33 }
 0x344   :  { %v1828_v36 = vpop.f32.mrf.mxu0  ;;  %v1835_v40 = vpop.f32.mrf.mxu1 }
 0x345   :  { %v2186_v39 = vadd.f32 %v301_v34, %v2082_v2 }
 0x346   :  { %v256_v41 = vpop.f32.mrf.mxu0 }
 0x347   :  { %v304_v42 = vadd.f32 %v303_v35, %v256_v41  ;;  %v311_v43 = vsel %vm75_vm1, %v2186_v39, 0.0  ;;  %v329_v44 = vmul.f32 %v2186_v39, %v2186_v39 }
 0x348   :  { %312 = vadd.xlane.f32.xlu1 %v311_v43  ;;  %v1829_v46 = vpop.f32.mrf.mxu0 }
 0x349   :  { %v2193_v47 = vadd.f32 %v304_v42, %v2089_v3  ;;  %v331_v49 = vsel %vm75_vm1, %v329_v44, 0.0  ;;  %v310_v3 = vld [vmem:[%s2530_s2 + $0x38] sm:$0xff] }
 0x34b   :  { %v314_v2 = vsel %vm75_vm1, %v2193_v47, 0.0  ;;  %v330_v50 = vmul.f32 %v2193_v47, %v2193_v47 }
 0x34c   :  { %332 = vadd.xlane.f32.xlu1 %v331_v49  ;;  %315 = vadd.xlane.f32.xlu0 %v314_v2 }
 0x34d   :  { %v334_v51 = vsel %vm75_vm1, %v330_v50, 0.0 }
 0x350   :  { %335 = vadd.xlane.f32.xlu0 %v334_v51 }
 0x35d   :  { %371 = vrot.lane.b32.xlu1 %v309_v52, %s2049_s18 }
 0x366   :  { %373 = vrot.lane.b32.xlu0 %v310_v3, %s2049_s18 }
 0x3d1   :  { %v313_v53 = vpop.xlane.xlu1 %312 }
 0x3d2   :  { %v317_v54 = vrot.slane %v313_v53, 4 }
 0x3d4   :  { %v318_v55 = vadd.f32 %v317_v54, %v313_v53 }
 0x3d5   :  { %v333_v56 = vpop.xlane.xlu1 %332  ;;  %v316_v57 = vpop.xlane.xlu0 %315 }
 0x3d6   :  { %v319_v58 = vrot.slane %v318_v55, 2  ;;  %v337_v59 = vrot.slane %v333_v56, 4  ;;  %v323_v60 = vrot.slane %v316_v57, 4 }
 0x3d8   :  { %v320_v61 = vadd.f32 %v319_v58, %v318_v55  ;;  %v338_v62 = vadd.f32 %v337_v59, %v333_v56  ;;  %v324_v63 = vadd.f32 %v323_v60, %v316_v57 }
 0x3d9   :  { %v336_v5 = vpop.xlane.xlu0 %335  ;;  %v372_v46 = vpop.permute.xlu1 %371 }
 0x3da   :  { %v321_v8 = vrot.slane %v320_v61, 1  ;;  %v339_v10 = vrot.slane %v338_v62, 2  ;;  %v325_v11 = vrot.slane %v324_v63, 2  ;;  %v343_v12 = vrot.slane %v336_v5, 4 }
 0x3dc   :  { %v322_v14 = vadd.f32 %v321_v8, %v320_v61  ;;  %v340_v16 = vadd.f32 %v339_v10, %v338_v62  ;;  %v326_v17 = vadd.f32 %v325_v11, %v324_v63  ;;  %v344_v18 = vadd.f32 %v343_v12, %v336_v5 }
 0x3dd   :  { %v374_v54 = vpop.permute.xlu0 %373 }
 0x3de   :  { %v349_v19 = vmul.f32 0.041666668, %v322_v14  ;;  %v341_v20 = vrot.slane %v340_v16, 1  ;;  %v327_v21 = vrot.slane %v326_v17, 1  ;;  %v345_v22 = vrot.slane %v344_v18, 2 }
 0x3e0   :  { %v342_v23 = vadd.f32 %v341_v20, %v340_v16  ;;  %v328_v24 = vadd.f32 %v327_v21, %v326_v17  ;;  %v346_v25 = vadd.f32 %v345_v22, %v344_v18  ;;  %v353_v26 = vmul.f32 %v349_v19, %v349_v19 }
 0x3e1   :  { %v359_v42 = vsub.f32 %v2186_v39, %v349_v19 }
 0x3e2   :  { %v351_v27 = vmul.f32 0.041666668, %v342_v23  ;;  %v350_v28 = vmul.f32 0.041666668, %v328_v24  ;;  %v347_v29 = vrot.slane %v346_v25, 1 }
 0x3e4   :  { %v355_v30 = vsub.f32 %v351_v27, %v353_v26  ;;  %v348_v31 = vadd.f32 %v347_v29, %v346_v25  ;;  %v354_v33 = vmul.f32 %v350_v28, %v350_v28  ;;  %v360_v2 = vsub.f32 %v2193_v47, %v350_v28  ;;  %v379_v47 = vld [vmem:[%s2530_s2 + $0x8] sm:$0x7] }
 0x3e5   :  { %v393_v57 = vrot.slane %v379_v47, %v2108_v9  ;;  %v407_v58 = vrot.slane %v379_v47, %v2102_v7  ;;  %v423_v5 = vrot.slane %v379_v47, %v2112_v13 }
 0x3e6   :  { %v357_v32 = vmax.f32 %v355_v30, 0.0  ;;  %v352_v34 = vmul.f32 0.041666668, %v348_v31 }
 0x3e8   :  { %v361_v35 = vadd.f32 1e-05, %v357_v32  ;;  %v356_v36 = vsub.f32 %v352_v34, %v354_v33 }
 0x3ea   :  { %1967 = vrsqrt.f32 %v361_v35  ;;  %v358_v40 = vmax.f32 %v356_v36, 0.0 }
 0x3ec   :  { %v362_v41 = vadd.f32 1e-05, %v358_v40 }
 0x3ee   :  { %1969 = vrsqrt.f32 %v362_v41 }
 0x3f7   :  { %v1968_v43 = vpop.eup %1967 }
 0x3f8   :  { %v365_v44 = vmul.f32 %v1968_v43, %v359_v42 }
 0x3fa   :  { %v367_v49 = vmul.f32 %v365_v44, %v309_v52 }
 0x3fb   :  { %v1970_v50 = vpop.eup %1969 }
 0x3fc   :  { %v2211_v51 = vadd.f32 %v372_v46, %v367_v49  ;;  %v366_v53 = vmul.f32 %v1970_v50, %v360_v2 }
 0x3fe   :  { %382 = vperm.xlu1 %1926, %v2211_v51   ;;  %397 = vperm.xlu0 %1927, %v2211_v51   ;;  %v368_v55 = vmul.f32 %v366_v53, %v310_v3 }
 0x400   :  { %v2215_v56 = vadd.f32 %v374_v54, %v368_v55 }
 0x402   :  { %1930 = vset.pattern.permute.xlu0 %v2045_v4  ;;  %387 = vperm.xlu1 %1926, %v2215_v56  }
 0x403   :  { %417 = vperm.xlu0 %1930, %v2215_v56  }
 0x406   :  { %1928 = vset.pattern.permute.xlu1 %v2043_v0 }
 0x407   :  { %401 = vperm.xlu1 %1928, %v2215_v56   ;;  %1933 = vset.pattern.permute.xlu0 %v2044_v1 }
 0x40b   :  { %1929 = vset.pattern.permute.xlu1 %v2045_v4 }
 0x40c   :  { %413 = vperm.xlu1 %1929, %v2211_v51  }
 0x410   :  { %1931 = vset.pattern.permute.xlu1 %v2044_v1 }
 0x479   :  { %v383_v39 = vpop.permute.xlu1 %382  ;;  %v398_v3 = vpop.permute.xlu0 %397 }
 0x47a   :  { %v394_v61 = vmul.f32 %v393_v57, %v383_v39  ;;  %v408_v62 = vmul.f32 %v407_v58, %v398_v3 }
 0x47c   :  { %v410_v12 = vadd.f32 %v408_v62, %v394_v61 }
 0x47d   :  { %v388_v52 = vpop.permute.xlu1 %387 }
 0x47e   :  { %v395_v63 = vmul.f32 %v393_v57, %v388_v52  ;;  %v418_v8 = vpop.permute.xlu0 %417 }
 0x47f   :  { %v425_v14 = vmul.f32 %v423_v5, %v418_v8 }
 0x482   :  { %v402_v59 = vpop.permute.xlu1 %401 }
 0x483   :  { %v409_v60 = vmul.f32 %v407_v58, %v402_v59 }
 0x485   :  { %v411_v10 = vadd.f32 %v409_v60, %v395_v63 }
 0x487   :  { %v414_v11 = vpop.permute.xlu1 %413  ;;  %v427_v17 = vadd.f32 %v425_v14, %v411_v10 }
 0x488   :  { %v424_v16 = vmul.f32 %v423_v5, %v414_v11 }
 0x48a   :  { %v426_v18 = vadd.f32 %v424_v16, %v410_v12 }
 0x48c   :  { %v428_v19 = vpack.c.bf16 %v427_v17, %v426_v18 }
 0x48e   :  { %498 = vrot.lane.b32.xlu0 %v428_v19, %s2050_s19  ;;  %430 = vrot.lane.b32.xlu1 %v428_v19, %s2049_s18 }
 0x492   :  { %500 = vrot.lane.b32.xlu1 %v428_v19, %s2048_s17 }
 0x500   :  { %v431_v20 = vpop.permute.xlu1 %430  ;;  %v499_v24 = vpop.permute.xlu0 %498 }
 0x501   :  { %v436_v21 = vsel %vm75_vm1, %v431_v20, 0 }
 0x502   :  { %1837 = vmatpush3.bf16.xpose.msra.mxu0 %v436_v21 }
 0x503   :  { %1848 = vmatprep.subr.bf16.mxu0 %v2046_v15 }
 0x504   :  { %v501_v22 = vpop.permute.xlu1 %500 }
 0x505   :  { %v506_v23 = vsel %vm75_vm1, %v501_v22, 0 }
 0x506   :  { %1843 = vmatpush3.bf16.xpose.msra.mxu1 %v506_v23 }
 0x507   :  { %1854 = vmatprep.subr.bf16.mxu1 %v2046_v15 }
 0x509   :  { %1839 = vmatmul.mubr.msk.bf16.vlgmr.msra.gmra.mxu0 %vm75_vm1, %v428_v19 }
 0x50a   :  { %1850 = vmatprep.mubr.msk.bf16.mxu0 %vm2047_vm0, %v2046_v15 }
 0x50d   :  { %1845 = vmatmul.mubr.msk.bf16.vlgmr.msra.gmra.mxu1 %vm75_vm1, %v499_v24 }
 0x50e   :  { %1856 = vmatprep.mubr.msk.bf16.mxu1 %vm2047_vm0, %v2046_v15 }
 0x5c9   :  { %v472_v25 = vpop.f32.mrf.mxu0 }
 0x5ca   :  { %v479_v26 = vmul.f32 %v472_v25, %v2144_v37 }
 0x5cb   :  { %v1840_v27 = vpop.f32.mrf.mxu0 }
 0x5cc   :  { %v481_v28 = vadd.f32 %v2149_v38, %v479_v26 }
 0x5cd   :  { %v475_v29 = vpop.f32.mrf.mxu0  ;;  %v542_v30 = vpop.f32.mrf.mxu1 }
 0x5ce   :  { %v483_v31 = vmul.f32 1.442695, %v481_v28  ;;  %v480_v32 = vmul.f32 %v475_v29, %v2156_v45  ;;  %v549_v33 = vmul.f32 %v542_v30, %v2144_v37 }
 0x5cf   :  { %v1841_v34 = vpop.f32.mrf.mxu0  ;;  %v1846_v35 = vpop.f32.mrf.mxu1 }
 0x5d0   :  { %1971 = vpow2.f32 %v483_v31  ;;  %v482_v36 = vadd.f32 %v2163_v48, %v480_v32  ;;  %v551_v40 = vadd.f32 %v2149_v38, %v549_v33 }
 0x5d1   :  { %v545_v41 = vpop.f32.mrf.mxu1 }
 0x5d2   :  { %v553_v42 = vmul.f32 1.442695, %v551_v40  ;;  %v550_v43 = vmul.f32 %v545_v41, %v2156_v45  ;;  %v485_v44 = vmul.f32 1.442695, %v482_v36  ;;  %v665_v36 = vld [vmem:[%s2530_s2 + $0x48] sm:$0xff] }
 0x5d3   :  { %v1847_v46 = vpop.f32.mrf.mxu1 }
 0x5d4   :  { %v552_v49 = vadd.f32 %v2163_v48, %v550_v43  ;;  %1973 = vpow2.f32 %v553_v42 }
 0x5d5   :  { %1975 = vpow2.f32 %v485_v44 }
 0x5d6   :  { %v555_v2 = vmul.f32 1.442695, %v552_v49 }
 0x5d8   :  { %1977 = vpow2.f32 %v555_v2 }
 0x5dd   :  { %v1972_v50 = vpop.eup %1971 }
 0x5de   :  { %v487_v53 = vsel %vm131_vm2, %v1972_v50, 0.0 }
 0x5df   :  { %488 = vadd.xlane.f32.xlu1 %v487_v53 }
 0x5e1   :  { %v1974_v54 = vpop.eup %1973 }
 0x5e2   :  { %v557_v55 = vsel %vm131_vm2, %v1974_v54, 0.0  ;;  %v1976_v39 = vpop.eup %1975 }
 0x5e3   :  { %558 = vadd.xlane.f32.xlu0 %v557_v55  ;;  %v490_v3 = vsel %vm131_vm2, %v1976_v39, 0.0 }
 0x5e5   :  { %v1978_v47 = vpop.eup %1977 }
 0x5e6   :  { %v560_v52 = vsel %vm131_vm2, %v1978_v47, 0.0 }
 0x5e7   :  { %561 = vadd.xlane.f32.xlu1 %v560_v52  ;;  %491 = vadd.xlane.f32.xlu0 %v490_v3 }
 0x5f8   :  { %615 = vrot.lane.b32.xlu1 %v428_v19, %s2052_s29 }
 0x5fd   :  { %568 = vrot.lane.b32.xlu0 %v428_v19, %s2051_s28 }
 0x668   :  { %v489_v57 = vpop.xlane.xlu1 %488 }
 0x66c   :  { %v559_v58 = vpop.xlane.xlu0 %558 }
 0x66d   :  { %1979 = vrcp.f32 %v559_v58 }
 0x66e   :  { %1981 = vrcp.f32 %v489_v57 }
 0x670   :  { %v562_v59 = vpop.xlane.xlu1 %561  ;;  %v492_v60 = vpop.xlane.xlu0 %491 }
 0x671   :  { %1983 = vrcp.f32 %v562_v59 }
 0x672   :  { %1985 = vrcp.f32 %v492_v60 }
 0x674   :  { %v616_v61 = vpop.permute.xlu1 %615  ;;  %v569_v62 = vpop.permute.xlu0 %568 }
 0x675   :  { %1855 = vmatpush3.bf16.msra.mxu1 %v616_v61  ;;  %1849 = vmatpush3.bf16.msra.mxu0 %v569_v62 }
 0x676   :  { %1866 = vmatprep.subr.bf16.mxu1 %v2046_v15  ;;  %1860 = vmatprep.subr.bf16.mxu0 %v2046_v15 }
 0x67a   :  { %v1980_v63 = vpop.eup %1979 }
 0x67b   :  { %v1982_v5 = vpop.eup %1981  ;;  %v565_v11 = vmul.f32 %v1980_v63, %v1974_v54 }
 0x67c   :  { %v495_v14 = vmul.f32 %v1982_v5, %v1972_v50 }
 0x67e   :  { %v1984_v8 = vpop.eup %1983 }
 0x67f   :  { %v1986_v10 = vpop.eup %1985  ;;  %v566_v12 = vmul.f32 %v1984_v8, %v1978_v47 }
 0x680   :  { %v496_v16 = vmul.f32 %v1986_v10, %v1976_v39 }
 0x681   :  { %v567_v17 = vpack.c.bf16 %v566_v12, %v565_v11 }
 0x682   :  { %v497_v18 = vpack.c.bf16 %v496_v16, %v495_v14 }
 0x683   :  { %1851 = vmatmul.mubr.msk.bf16.vlgmr.msra.gmra.mxu0 %vm131_vm2, %v567_v17 }
 0x684   :  { %1857 = vmatmul.mubr.msk.bf16.vlgmr.msra.gmra.mxu1 %vm131_vm2, %v497_v18  ;;  %1862 = vmatprep.mubr.msk.bf16.mxu0 %vm2047_vm0, %v2046_v15 }
 0x685   :  { %1868 = vmatprep.mubr.msk.bf16.mxu1 %vm2047_vm0, %v2046_v15 }
 0x743   :  { %v608_v19 = vpop.f32.mrf.mxu0 }
 0x744   :  { %v655_v20 = vpop.f32.mrf.mxu1 }
 0x745   :  { %v656_v21 = vadd.f32 %v655_v20, %v608_v19  ;;  %v1852_v22 = vpop.f32.mrf.mxu0 }
 0x746   :  { %v1858_v23 = vpop.f32.mrf.mxu1 }
 0x747   :  { %v2268_v24 = vadd.f32 %v656_v21, %v2211_v51  ;;  %v611_v25 = vpop.f32.mrf.mxu0 }
 0x748   :  { %v658_v26 = vpop.f32.mrf.mxu1 }
 0x749   :  { %v659_v27 = vadd.f32 %v658_v26, %v611_v25  ;;  %v666_v28 = vsel %vm75_vm1, %v2268_v24, 0.0  ;;  %v1853_v29 = vpop.f32.mrf.mxu0  ;;  %v684_v34 = vmul.f32 %v2268_v24, %v2268_v24 }
 0x74a   :  { %v1859_v30 = vpop.f32.mrf.mxu1  ;;  %667 = vadd.xlane.f32.xlu1 %v666_v28 }
 0x74b   :  { %v663_v31 = vadd.f32 %v659_v27, %v2215_v56  ;;  %v686_v35 = vsel %vm75_vm1, %v684_v34, 0.0  ;;  %v664_v56 = vld [vmem:[%s2530_s2 + $0x40] sm:$0xff] }
 0x74d   :  { %v669_v32 = vsel %vm75_vm1, %v663_v31, 0.0  ;;  %v685_v33 = vmul.f32 %v663_v31, %v663_v31 }
 0x74e   :  { %670 = vadd.xlane.f32.xlu0 %v669_v32 }
 0x74f   :  { %v689_v51 = vsel %vm75_vm1, %v685_v33, 0.0 }
 0x750   :  { %690 = vadd.xlane.f32.xlu1 %v689_v51 }
 0x752   :  { %687 = vadd.xlane.f32.xlu0 %v686_v35 }
 0x761   :  { %728 = vrot.lane.b32.xlu1 %v665_v36, %s2049_s18 }
 0x768   :  { %726 = vrot.lane.b32.xlu0 %v664_v56, %s2049_s18 }
 0x7d3   :  { %v668_v40 = vpop.xlane.xlu1 %667 }
 0x7d4   :  { %v672_v41 = vrot.slane %v668_v40, 4 }
 0x7d6   :  { %v673_v42 = vadd.f32 %v672_v41, %v668_v40 }
 0x7d7   :  { %v671_v43 = vpop.xlane.xlu0 %670 }
 0x7d8   :  { %v674_v44 = vrot.slane %v673_v42, 2  ;;  %v678_v46 = vrot.slane %v671_v43, 4 }
 0x7d9   :  { %v691_v49 = vpop.xlane.xlu1 %690 }
 0x7da   :  { %v675_v2 = vadd.f32 %v674_v44, %v673_v42  ;;  %v679_v50 = vadd.f32 %v678_v46, %v671_v43  ;;  %v698_v53 = vrot.slane %v691_v49, 4 }
 0x7db   :  { %v688_v54 = vpop.xlane.xlu0 %687 }
 0x7dc   :  { %v676_v55 = vrot.slane %v675_v2, 1  ;;  %v680_v39 = vrot.slane %v679_v50, 2  ;;  %v699_v47 = vadd.f32 %v698_v53, %v691_v49  ;;  %v692_v52 = vrot.slane %v688_v54, 4 }
 0x7dd   :  { %v729_v34 = vpop.permute.xlu1 %728  ;;  %v2299_v49 = vsub.s32 3, %v2099_v6 }
 0x7de   :  { %v681_v3 = vadd.f32 %v680_v39, %v679_v50  ;;  %v700_v57 = vrot.slane %v699_v47, 2  ;;  %v693_v58 = vadd.f32 %v692_v52, %v688_v54  ;;  %v677_v59 = vadd.f32 %v676_v55, %v675_v2 }
 0x7df   :  { %v727_v40 = vpop.permute.xlu0 %726 }
 0x7e0   :  { %v682_v60 = vrot.slane %v681_v3, 1  ;;  %v701_v61 = vadd.f32 %v700_v57, %v699_v47  ;;  %v694_v62 = vrot.slane %v693_v58, 2  ;;  %v704_v10 = vmul.f32 0.041666668, %v677_v59 }
 0x7e2   :  { %v683_v63 = vadd.f32 %v682_v60, %v681_v3  ;;  %v702_v5 = vrot.slane %v701_v61, 1  ;;  %v695_v8 = vadd.f32 %v694_v62, %v693_v58  ;;  %v708_v19 = vmul.f32 %v704_v10, %v704_v10 }
 0x7e3   :  { %v714_v32 = vsub.f32 %v2268_v24, %v704_v10 }
 0x7e4   :  { %v705_v11 = vmul.f32 0.041666668, %v683_v63  ;;  %v703_v12 = vadd.f32 %v702_v5, %v701_v61  ;;  %v696_v14 = vrot.slane %v695_v8, 1 }
 0x7e6   :  { %v709_v16 = vmul.f32 %v705_v11, %v705_v11  ;;  %v707_v17 = vmul.f32 0.041666668, %v703_v12  ;;  %v697_v18 = vadd.f32 %v696_v14, %v695_v8  ;;  %v715_v28 = vsub.f32 %v663_v31, %v705_v11 }
 0x7e8   :  { %v711_v20 = vsub.f32 %v707_v17, %v709_v16  ;;  %v706_v21 = vmul.f32 0.041666668, %v697_v18 }
 0x7ea   :  { %v713_v22 = vmax.f32 %v711_v20, 0.0  ;;  %v710_v23 = vsub.f32 %v706_v21, %v708_v19  ;;  %v794_v20 = vld [vmem:[%s2530_s2 + $0x58] sm:$0xff]  ;;  %v793_v21 = vld [vmem:[%s2530_s2 + $0x50] sm:$0xff] }
 0x7ec   :  { %v717_v25 = vadd.f32 1e-05, %v713_v22  ;;  %v712_v26 = vmax.f32 %v710_v23, 0.0 }
 0x7ee   :  { %1987 = vrsqrt.f32 %v717_v25  ;;  %v716_v27 = vadd.f32 1e-05, %v712_v26 }
 0x7f0   :  { %1989 = vrsqrt.f32 %v716_v27 }
 0x7fb   :  { %v1988_v29 = vpop.eup %1987 }
 0x7fc   :  { %v721_v30 = vmul.f32 %v1988_v29, %v715_v28 }
 0x7fd   :  { %v1990_v33 = vpop.eup %1989 }
 0x7fe   :  { %v723_v51 = vmul.f32 %v721_v30, %v665_v36  ;;  %v720_v35 = vmul.f32 %v1990_v33, %v714_v32  ;;  %v734_v36 = vld [vmem:[%s2530_s2 + $0x20] sm:$0xf] }
 0x7ff   :  { %v748_v44 = vrot.slane %v734_v36, %v2108_v9  ;;  %v778_v46 = vrot.slane %v734_v36, %v2112_v13  ;;  %v786_v39 = vrot.slane %v734_v36, %v2299_v49 }
 0x800   :  { %v733_v41 = vadd.f32 %v729_v34, %v723_v51  ;;  %v722_v42 = vmul.f32 %v720_v35, %v664_v56  ;;  %v762_v56 = vrot.slane %v734_v36, %v2102_v7 }
 0x802   :  { %v732_v43 = vadd.f32 %v727_v40, %v722_v42  ;;  %742 = vperm.xlu0 %1933, %v733_v41  }
 0x804   :  { %737 = vperm.xlu1 %1931, %v732_v43  }
 0x806   :  { %1934 = vset.pattern.permute.xlu0 %v2045_v4 }
 0x807   :  { %768 = vperm.xlu0 %1934, %v732_v43  }
 0x808   :  { %1932 = vset.pattern.permute.xlu1 %v2043_v0 }
 0x809   :  { %752 = vperm.xlu1 %1932, %v732_v43  }
 0x80b   :  { %1938 = vset.pattern.permute.xlu0 %v2044_v1 }
 0x80d   :  { %756 = vperm.xlu1 %1932, %v733_v41  }
 0x811   :  { %1935 = vset.pattern.permute.xlu1 %v2045_v4 }
 0x812   :  { %772 = vperm.xlu1 %1935, %v733_v41  }
 0x816   :  { %1936 = vset.pattern.permute.xlu1 %v2044_v1 }
 0x87d   :  { %v743_v24 = vpop.permute.xlu0 %742 }
 0x87e   :  { %v750_v59 = vmul.f32 %v748_v44, %v743_v24 }
 0x87f   :  { %v738_v31 = vpop.permute.xlu1 %737 }
 0x880   :  { %v749_v53 = vmul.f32 %v748_v44, %v738_v31 }
 0x882   :  { %v769_v2 = vpop.permute.xlu0 %768 }
 0x883   :  { %v779_v55 = vmul.f32 %v778_v46, %v769_v2 }
 0x884   :  { %v753_v50 = vpop.permute.xlu1 %752 }
 0x885   :  { %v763_v54 = vmul.f32 %v762_v56, %v753_v50 }
 0x887   :  { %v765_v47 = vadd.f32 %v763_v54, %v749_v53 }
 0x888   :  { %v757_v52 = vpop.permute.xlu1 %756 }
 0x889   :  { %v781_v3 = vadd.f32 %v779_v55, %v765_v47  ;;  %v764_v57 = vmul.f32 %v762_v56, %v757_v52 }
 0x88b   :  { %v787_v58 = vadd.f32 %v786_v39, %v781_v3  ;;  %v766_v62 = vadd.f32 %v764_v57, %v750_v59 }
 0x88d   :  { %v773_v60 = vpop.permute.xlu1 %772  ;;  %v789_v61 = vmax.f32 %v787_v58, 0.0 }
 0x88e   :  { %v780_v63 = vmul.f32 %v778_v46, %v773_v60 }
 0x88f   :  { %v2302_v5 = vadd.f32 %v789_v61, %v732_v43 }
 0x890   :  { %v782_v6 = vadd.f32 %v780_v63, %v766_v62 }
 0x891   :  { %v795_v8 = vsel %vm75_vm1, %v2302_v5, 0.0  ;;  %v813_v17 = vmul.f32 %v2302_v5, %v2302_v5 }
 0x892   :  { %v788_v10 = vadd.f32 %v786_v39, %v782_v6  ;;  %796 = vadd.xlane.f32.xlu1 %v795_v8 }
 0x893   :  { %v815_v19 = vsel %vm75_vm1, %v813_v17, 0.0 }
 0x894   :  { %v790_v11 = vmax.f32 %v788_v10, 0.0 }
 0x896   :  { %v792_v12 = vadd.f32 %v790_v11, %v733_v41 }
 0x898   :  { %v798_v14 = vsel %vm75_vm1, %v792_v12, 0.0  ;;  %v814_v16 = vmul.f32 %v792_v12, %v792_v12 }
 0x899   :  { %799 = vadd.xlane.f32.xlu0 %v798_v14 }
 0x89a   :  { %v818_v18 = vsel %vm75_vm1, %v814_v16, 0.0 }
 0x89b   :  { %819 = vadd.xlane.f32.xlu1 %v818_v18 }
 0x89d   :  { %816 = vadd.xlane.f32.xlu0 %v815_v19 }
 0x8ac   :  { %857 = vrot.lane.b32.xlu1 %v794_v20, %s2049_s18 }
 0x8b3   :  { %855 = vrot.lane.b32.xlu0 %v793_v21, %s2049_s18 }
 0x91b   :  { %v797_v22 = vpop.xlane.xlu1 %796 }
 0x91c   :  { %v801_v23 = vrot.slane %v797_v22, 4 }
 0x91e   :  { %v802_v25 = vadd.f32 %v801_v23, %v797_v22 }
 0x920   :  { %v803_v26 = vrot.slane %v802_v25, 2 }
 0x922   :  { %v800_v27 = vpop.xlane.xlu0 %799  ;;  %v804_v28 = vadd.f32 %v803_v26, %v802_v25 }
 0x923   :  { %v807_v29 = vrot.slane %v800_v27, 4 }
 0x924   :  { %v820_v30 = vpop.xlane.xlu1 %819  ;;  %v805_v51 = vrot.slane %v804_v28, 1 }
 0x925   :  { %v808_v32 = vadd.f32 %v807_v29, %v800_v27  ;;  %v827_v33 = vrot.slane %v820_v30, 4 }
 0x926   :  { %v817_v34 = vpop.xlane.xlu0 %816  ;;  %v806_v31 = vadd.f32 %v805_v51, %v804_v28 }
 0x927   :  { %v809_v35 = vrot.slane %v808_v32, 2  ;;  %v828_v40 = vadd.f32 %v827_v33, %v820_v30  ;;  %v821_v41 = vrot.slane %v817_v34, 4 }
 0x928   :  { %v833_v53 = vmul.f32 0.041666668, %v806_v31  ;;  %v858_v17 = vpop.permute.xlu1 %857 }
 0x929   :  { %v810_v42 = vadd.f32 %v809_v35, %v808_v32  ;;  %v829_v43 = vrot.slane %v828_v40, 2  ;;  %v822_v24 = vadd.f32 %v821_v41, %v817_v34 }
 0x92a   :  { %v837_v57 = vmul.f32 %v833_v53, %v833_v53  ;;  %v843_v14 = vsub.f32 %v2302_v5, %v833_v53  ;;  %v856_v22 = vpop.permute.xlu0 %855 }
 0x92b   :  { %v811_v36 = vrot.slane %v810_v42, 1  ;;  %v830_v56 = vadd.f32 %v829_v43, %v828_v40  ;;  %v823_v44 = vrot.slane %v822_v24, 2 }
 0x92d   :  { %v812_v46 = vadd.f32 %v811_v36, %v810_v42  ;;  %v831_v2 = vrot.slane %v830_v56, 1  ;;  %v824_v50 = vadd.f32 %v823_v44, %v822_v24 }
 0x92f   :  { %v834_v54 = vmul.f32 0.041666668, %v812_v46  ;;  %v832_v55 = vadd.f32 %v831_v2, %v830_v56  ;;  %v825_v39 = vrot.slane %v824_v50, 1 }
 0x931   :  { %v838_v47 = vmul.f32 %v834_v54, %v834_v54  ;;  %v836_v52 = vmul.f32 0.041666668, %v832_v55  ;;  %v826_v3 = vadd.f32 %v825_v39, %v824_v50  ;;  %v844_v8 = vsub.f32 %v792_v12, %v834_v54  ;;  %v863_v12 = vld [vmem:[%s2530_s2 + $0x10] sm:$0x7] }
 0x932   :  { %v877_v28 = vrot.slane %v863_v12, %v2108_v9  ;;  %v907_v33 = vrot.slane %v863_v12, %v2112_v13 }
 0x933   :  { %v840_v58 = vsub.f32 %v836_v52, %v838_v47  ;;  %v835_v59 = vmul.f32 0.041666668, %v826_v3 }
 0x935   :  { %v842_v60 = vmax.f32 %v840_v58, 0.0  ;;  %v839_v61 = vsub.f32 %v835_v59, %v837_v57 }
 0x937   :  { %v846_v62 = vadd.f32 1e-05, %v842_v60  ;;  %v841_v63 = vmax.f32 %v839_v61, 0.0 }
 0x939   :  { %1991 = vrsqrt.f32 %v846_v62  ;;  %v845_v6 = vadd.f32 1e-05, %v841_v63 }
 0x93b   :  { %1993 = vrsqrt.f32 %v845_v6 }
 0x946   :  { %v1992_v10 = vpop.eup %1991 }
 0x947   :  { %v850_v11 = vmul.f32 %v1992_v10, %v844_v8 }
 0x948   :  { %v1994_v16 = vpop.eup %1993 }
 0x949   :  { %v852_v18 = vmul.f32 %v850_v11, %v794_v20  ;;  %v849_v19 = vmul.f32 %v1994_v16, %v843_v14  ;;  %v891_v20 = vrot.slane %v863_v12, %v2102_v7 }
 0x94b   :  { %v2320_v23 = vadd.f32 %v858_v17, %v852_v18  ;;  %v851_v25 = vmul.f32 %v849_v19, %v793_v21 }
 0x94d   :  { %v2322_v26 = vadd.f32 %v856_v22, %v851_v25  ;;  %871 = vperm.xlu0 %1938, %v2320_v23  }
 0x94f   :  { %866 = vperm.xlu1 %1936, %v2322_v26  }
 0x951   :  { %1939 = vset.pattern.permute.xlu0 %v2045_v4 }
 0x952   :  { %897 = vperm.xlu0 %1939, %v2322_v26  }
 0x953   :  { %1937 = vset.pattern.permute.xlu1 %v2043_v0 }
 0x954   :  { %881 = vperm.xlu1 %1937, %v2322_v26  }
 0x956   :  { %1942 = vset.pattern.permute.xlu0 %v2043_v0 }
 0x958   :  { %885 = vperm.xlu1 %1937, %v2320_v23  }
 0x95c   :  { %1940 = vset.pattern.permute.xlu1 %v2045_v4 }
 0x95d   :  { %901 = vperm.xlu1 %1940, %v2320_v23  }
 0x961   :  { %1941 = vset.pattern.permute.xlu1 %v2044_v1 }
 0x9c8   :  { %v872_v27 = vpop.permute.xlu0 %871 }
 0x9c9   :  { %v879_v35 = vmul.f32 %v877_v28, %v872_v27 }
 0x9ca   :  { %v867_v5 = vpop.permute.xlu1 %866 }
 0x9cb   :  { %v878_v32 = vmul.f32 %v877_v28, %v867_v5 }
 0x9cd   :  { %v898_v51 = vpop.permute.xlu0 %897 }
 0x9ce   :  { %v908_v42 = vmul.f32 %v907_v33, %v898_v51 }
 0x9cf   :  { %v882_v21 = vpop.permute.xlu1 %881 }
 0x9d0   :  { %v892_v29 = vmul.f32 %v891_v20, %v882_v21 }
 0x9d2   :  { %v894_v40 = vadd.f32 %v892_v29, %v878_v32 }
 0x9d3   :  { %v886_v30 = vpop.permute.xlu1 %885 }
 0x9d4   :  { %v893_v34 = vmul.f32 %v891_v20, %v886_v30  ;;  %v910_v31 = vadd.f32 %v908_v42, %v894_v40 }
 0x9d6   :  { %v895_v43 = vadd.f32 %v893_v34, %v879_v35 }
 0x9d8   :  { %v902_v41 = vpop.permute.xlu1 %901 }
 0x9d9   :  { %v909_v24 = vmul.f32 %v907_v33, %v902_v41 }
 0x9db   :  { %v911_v36 = vadd.f32 %v909_v24, %v895_v43 }
 0x9dd   :  { %v912_v56 = vpack.c.bf16 %v911_v36, %v910_v31 }
 0x9df   :  { %984 = vrot.lane.b32.xlu0 %v912_v56, %s2048_s17  ;;  %914 = vrot.lane.b32.xlu1 %v912_v56, %s2049_s18 }
 0x9e3   :  { %982 = vrot.lane.b32.xlu1 %v912_v56, %s2050_s19 }
 0xa51   :  { %v985_v44 = vpop.permute.xlu0 %984  ;;  %v915_v46 = vpop.permute.xlu1 %914 }
 0xa52   :  { %v990_v2 = vsel %vm75_vm1, %v985_v44, 0  ;;  %v920_v50 = vsel %vm75_vm1, %v915_v46, 0 }
 0xa53   :  { %1861 = vmatpush3.bf16.xpose.msra.mxu0 %v920_v50  ;;  %1867 = vmatpush3.bf16.xpose.msra.mxu1 %v990_v2 }
 0xa54   :  { %1872 = vmatprep.subr.bf16.mxu0 %v2046_v15  ;;  %1878 = vmatprep.subr.bf16.mxu1 %v2046_v15 }
 0xa55   :  { %v983_v53 = vpop.permute.xlu1 %982 }
 0xa5a   :  { %1863 = vmatmul.mubr.msk.bf16.vlgmr.msra.gmra.mxu0 %vm75_vm1, %v912_v56  ;;  %1869 = vmatmul.mubr.msk.bf16.vlgmr.msra.gmra.mxu1 %vm75_vm1, %v983_v53 }
 0xa5b   :  { %1880 = vmatprep.mubr.msk.bf16.mxu1 %vm2047_vm0, %v2046_v15  ;;  %1874 = vmatprep.mubr.msk.bf16.mxu0 %vm2047_vm0, %v2046_v15 }
 0xb1a   :  { %v956_v54 = vpop.f32.mrf.mxu0  ;;  %v1026_v55 = vpop.f32.mrf.mxu1 }
 0xb1b   :  { %v963_v39 = vmul.f32 %v956_v54, %v2144_v37  ;;  %v1033_v47 = vmul.f32 %v1026_v55, %v2144_v37 }
 0xb1c   :  { %v1864_v52 = vpop.f32.mrf.mxu0  ;;  %v1870_v3 = vpop.f32.mrf.mxu1 }
 0xb1d   :  { %v965_v57 = vadd.f32 %v2149_v38, %v963_v39  ;;  %v1035_v58 = vadd.f32 %v2149_v38, %v1033_v47 }
 0xb1e   :  { %v959_v59 = vpop.f32.mrf.mxu0  ;;  %v1029_v60 = vpop.f32.mrf.mxu1 }
 0xb1f   :  { %v967_v61 = vmul.f32 1.442695, %v965_v57  ;;  %v1037_v62 = vmul.f32 1.442695, %v1035_v58  ;;  %v964_v63 = vmul.f32 %v959_v59, %v2156_v45  ;;  %v1034_v6 = vmul.f32 %v1029_v60, %v2156_v45  ;;  %v1148_v58 = vld [vmem:[%s2530_s2 + $0x60] sm:$0xff] }
 0xb20   :  { %v1865_v8 = vpop.f32.mrf.mxu0  ;;  %v1871_v10 = vpop.f32.mrf.mxu1 }
 0xb21   :  { %1995 = vpow2.f32 %v967_v61  ;;  %v966_v11 = vadd.f32 %v2163_v48, %v964_v63  ;;  %v1036_v37 = vadd.f32 %v2163_v48, %v1034_v6 }
 0xb22   :  { %1997 = vpow2.f32 %v1037_v62 }
 0xb23   :  { %v969_v14 = vmul.f32 1.442695, %v966_v11  ;;  %v1039_v16 = vmul.f32 1.442695, %v1036_v37 }
 0xb25   :  { %1999 = vpow2.f32 %v969_v14 }
 0xb26   :  { %2001 = vpow2.f32 %v1039_v16 }
 0xb2e   :  { %v1996_v38 = vpop.eup %1995 }
 0xb2f   :  { %v971_v17 = vsel %vm131_vm2, %v1996_v38, 0.0  ;;  %v1998_v18 = vpop.eup %1997 }
 0xb30   :  { %972 = vadd.xlane.f32.xlu0 %v971_v17  ;;  %v1041_v45 = vsel %vm131_vm2, %v1998_v18, 0.0 }
 0xb32   :  { %v2000_v19 = vpop.eup %1999 }
 0xb33   :  { %v974_v22 = vsel %vm131_vm2, %v2000_v19, 0.0  ;;  %v2002_v25 = vpop.eup %2001 }
 0xb34   :  { %1042 = vadd.xlane.f32.xlu0 %v1041_v45  ;;  %975 = vadd.xlane.f32.xlu1 %v974_v22  ;;  %v1044_v48 = vsel %vm131_vm2, %v2002_v25, 0.0 }
 0xb38   :  { %1045 = vadd.xlane.f32.xlu0 %v1044_v48 }
 0xb45   :  { %1052 = vrot.lane.b32.xlu1 %v912_v56, %s2051_s28 }
 0xb4e   :  { %1099 = vrot.lane.b32.xlu0 %v912_v56, %s2052_s29 }
 0xbb9   :  { %v973_v5 = vpop.xlane.xlu0 %972 }
 0xbba   :  { %2003 = vrcp.f32 %v973_v5 }
 0xbbd   :  { %v1043_v12 = vpop.xlane.xlu0 %1042  ;;  %v976_v20 = vpop.xlane.xlu1 %975 }
 0xbbe   :  { %2005 = vrcp.f32 %v976_v20 }
 0xbbf   :  { %2007 = vrcp.f32 %v1043_v12 }
 0xbc1   :  { %v1046_v21 = vpop.xlane.xlu0 %1045  ;;  %v1053_v27 = vpop.permute.xlu1 %1052 }
 0xbc2   :  { %2009 = vrcp.f32 %v1046_v21  ;;  %1873 = vmatpush3.bf16.msra.mxu0 %v1053_v27 }
 0xbc3   :  { %1884 = vmatprep.subr.bf16.mxu0 %v2046_v15 }
 0xbc5   :  { %v1100_v28 = vpop.permute.xlu0 %1099 }
 0xbc6   :  { %1879 = vmatpush3.bf16.msra.mxu1 %v1100_v28 }
 0xbc7   :  { %1890 = vmatprep.subr.bf16.mxu1 %v2046_v15  ;;  %v2004_v29 = vpop.eup %2003 }
 0xbc8   :  { %v979_v33 = vmul.f32 %v2004_v29, %v1996_v38 }
 0xbcb   :  { %v2006_v30 = vpop.eup %2005 }
 0xbcc   :  { %v2008_v32 = vpop.eup %2007  ;;  %v980_v34 = vmul.f32 %v2006_v30, %v2000_v19 }
 0xbcd   :  { %v1049_v40 = vmul.f32 %v2008_v32, %v1998_v18 }
 0xbce   :  { %v981_v35 = vpack.c.bf16 %v980_v34, %v979_v33 }
 0xbcf   :  { %v2010_v51 = vpop.eup %2009 }
 0xbd0   :  { %v1050_v41 = vmul.f32 %v2010_v51, %v2002_v25  ;;  %1881 = vmatmul.mubr.msk.bf16.vlgmr.msra.gmra.mxu1 %vm131_vm2, %v981_v35 }
 0xbd1   :  { %1892 = vmatprep.mubr.msk.bf16.mxu1 %vm2047_vm0, %v2046_v15 }
 0xbd2   :  { %v1051_v42 = vpack.c.bf16 %v1050_v41, %v1049_v40 }
 0xbd4   :  { %1875 = vmatmul.mubr.msk.bf16.vlgmr.msra.gmra.mxu0 %vm131_vm2, %v1051_v42 }
 0xbd5   :  { %1886 = vmatprep.mubr.msk.bf16.mxu0 %vm2047_vm0, %v2046_v15 }
 0xc90   :  { %v1139_v43 = vpop.f32.mrf.mxu1 }
 0xc92   :  { %v1882_v24 = vpop.f32.mrf.mxu1 }
 0xc94   :  { %v1092_v31 = vpop.f32.mrf.mxu0  ;;  %v1142_v56 = vpop.f32.mrf.mxu1 }
 0xc95   :  { %v1140_v36 = vadd.f32 %v1139_v43, %v1092_v31 }
 0xc96   :  { %v1876_v44 = vpop.f32.mrf.mxu0  ;;  %v1883_v2 = vpop.f32.mrf.mxu1 }
 0xc97   :  { %v2377_v46 = vadd.f32 %v1140_v36, %v2322_v26 }
 0xc98   :  { %v1095_v50 = vpop.f32.mrf.mxu0 }
 0xc99   :  { %v1143_v53 = vadd.f32 %v1142_v56, %v1095_v50  ;;  %v1150_v54 = vsel %vm75_vm1, %v2377_v46, 0.0  ;;  %v1168_v55 = vmul.f32 %v2377_v46, %v2377_v46 }
 0xc9a   :  { %1151 = vadd.xlane.f32.xlu1 %v1150_v54  ;;  %v1877_v39 = vpop.f32.mrf.mxu0 }
 0xc9b   :  { %v2384_v47 = vadd.f32 %v1143_v53, %v2320_v23  ;;  %v1170_v52 = vsel %vm75_vm1, %v1168_v55, 0.0  ;;  %v1149_v23 = vld [vmem:[%s2530_s2 + $0x68] sm:$0xff] }
 0xc9d   :  { %v1153_v26 = vsel %vm75_vm1, %v2384_v47, 0.0  ;;  %v1169_v3 = vmul.f32 %v2384_v47, %v2384_v47 }
 0xc9e   :  { %1171 = vadd.xlane.f32.xlu1 %v1170_v52  ;;  %1154 = vadd.xlane.f32.xlu0 %v1153_v26 }
 0xc9f   :  { %v1173_v57 = vsel %vm75_vm1, %v1169_v3, 0.0 }
 0xca2   :  { %1174 = vadd.xlane.f32.xlu0 %v1173_v57 }
 0xcaf   :  { %1210 = vrot.lane.b32.xlu1 %v1148_v58, %s2049_s18 }
 0xcb8   :  { %1212 = vrot.lane.b32.xlu0 %v1149_v23, %s2049_s18 }
 0xd23   :  { %v1152_v59 = vpop.xlane.xlu1 %1151 }
 0xd24   :  { %v1156_v60 = vrot.slane %v1152_v59, 4 }
 0xd26   :  { %v1157_v61 = vadd.f32 %v1156_v60, %v1152_v59 }
 0xd27   :  { %v1172_v62 = vpop.xlane.xlu1 %1171  ;;  %v1155_v63 = vpop.xlane.xlu0 %1154 }
 0xd28   :  { %v1158_v6 = vrot.slane %v1157_v61, 2  ;;  %v1176_v8 = vrot.slane %v1172_v62, 4  ;;  %v1162_v10 = vrot.slane %v1155_v63, 4 }
 0xd2a   :  { %v1159_v11 = vadd.f32 %v1158_v6, %v1157_v61  ;;  %v1177_v37 = vadd.f32 %v1176_v8, %v1172_v62  ;;  %v1163_v14 = vadd.f32 %v1162_v10, %v1155_v63 }
 0xd2b   :  { %v1175_v16 = vpop.xlane.xlu0 %1174  ;;  %v1211_v50 = vpop.permute.xlu1 %1210 }
 0xd2c   :  { %v1160_v38 = vrot.slane %v1159_v11, 1  ;;  %v1178_v17 = vrot.slane %v1177_v37, 2  ;;  %v1164_v18 = vrot.slane %v1163_v14, 2  ;;  %v1182_v19 = vrot.slane %v1175_v16, 4 }
 0xd2e   :  { %v1161_v45 = vadd.f32 %v1160_v38, %v1159_v11  ;;  %v1179_v22 = vadd.f32 %v1178_v17, %v1177_v37  ;;  %v1165_v25 = vadd.f32 %v1164_v18, %v1163_v14  ;;  %v1183_v48 = vadd.f32 %v1182_v19, %v1175_v16 }
 0xd2f   :  { %v1213_v26 = vpop.permute.xlu0 %1212 }
 0xd30   :  { %v1188_v5 = vmul.f32 0.041666668, %v1161_v45  ;;  %v1180_v12 = vrot.slane %v1179_v22, 1  ;;  %v1166_v20 = vrot.slane %v1165_v25, 1  ;;  %v1184_v21 = vrot.slane %v1183_v48, 2 }
 0xd32   :  { %v1181_v27 = vadd.f32 %v1180_v12, %v1179_v22  ;;  %v1167_v28 = vadd.f32 %v1166_v20, %v1165_v25  ;;  %v1185_v29 = vadd.f32 %v1184_v21, %v1183_v48  ;;  %v1192_v30 = vmul.f32 %v1188_v5, %v1188_v5  ;;  %v2039_v20 = vld [vmem:[%s2531_s1] sm:$0xff] }
 0xd33   :  { %v1198_v56 = vsub.f32 %v2377_v46, %v1188_v5 }
 0xd34   :  { %v1190_v32 = vmul.f32 0.041666668, %v1181_v27  ;;  %v1189_v33 = vmul.f32 0.041666668, %v1167_v28  ;;  %v1186_v34 = vrot.slane %v1185_v29, 1  ;;  %v2040_v28 = vld [vmem:[%s2531_s1 + $0x10] sm:$0xff] }
 0xd36   :  { %v1194_v51 = vsub.f32 %v1190_v32, %v1192_v30  ;;  %v1187_v35 = vadd.f32 %v1186_v34, %v1185_v29  ;;  %v1193_v41 = vmul.f32 %v1189_v33, %v1189_v33  ;;  %v1199_v54 = vsub.f32 %v2384_v47, %v1189_v33  ;;  %v1218_v47 = vld [vmem:[%s2530_s2 + $0x18] sm:$0x7]  ;;  %v2041_v34 = vld [vmem:[%s2531_s1 + $0x8] sm:$0xff] }
 0xd37   :  { %v1232_v59 = vrot.slane %v1218_v47, %v2108_v9  ;;  %v1246_v60 = vrot.slane %v1218_v47, %v2102_v7  ;;  %v1262_v10 = vrot.slane %v1218_v47, %v2112_v13 }
 0xd38   :  { %v1196_v40 = vmax.f32 %v1194_v51, 0.0  ;;  %v1191_v42 = vmul.f32 0.041666668, %v1187_v35 }
 0xd3a   :  { %v1200_v43 = vadd.f32 1e-05, %v1196_v40  ;;  %v1195_v24 = vsub.f32 %v1191_v42, %v1193_v41  ;;  %v2042_v41 = vld [vmem:[%s2531_s1 + $0x18] sm:$0xff] }
 0xd3c   :  { %2011 = vrsqrt.f32 %v1200_v43  ;;  %v1197_v31 = vmax.f32 %v1195_v24, 0.0 }
 0xd3e   :  { %v1201_v36 = vadd.f32 1e-05, %v1197_v31 }
 0xd40   :  { %2013 = vrsqrt.f32 %v1201_v36 }
 0xd49   :  { %v2012_v44 = vpop.eup %2011 }
 0xd4a   :  { %v1204_v2 = vmul.f32 %v2012_v44, %v1198_v56 }
 0xd4c   :  { %v1206_v53 = vmul.f32 %v1204_v2, %v1148_v58 }
 0xd4d   :  { %v2014_v55 = vpop.eup %2013 }
 0xd4e   :  { %v2402_v39 = vadd.f32 %v1211_v50, %v1206_v53  ;;  %v1205_v52 = vmul.f32 %v2014_v55, %v1199_v54 }
 0xd50   :  { %1221 = vperm.xlu1 %1941, %v2402_v39   ;;  %1236 = vperm.xlu0 %1942, %v2402_v39   ;;  %v1207_v3 = vmul.f32 %v1205_v52, %v1149_v23 }
 0xd52   :  { %v2406_v57 = vadd.f32 %v1213_v26, %v1207_v3 }
 0xd54   :  { %1945 = vset.pattern.permute.xlu0 %v2045_v4  ;;  %1226 = vperm.xlu1 %1941, %v2406_v57  }
 0xd55   :  { %1256 = vperm.xlu0 %1945, %v2406_v57  }
 0xd58   :  { %1943 = vset.pattern.permute.xlu1 %v2043_v0 }
 0xd59   :  { %1240 = vperm.xlu1 %1943, %v2406_v57   ;;  %1948 = vset.pattern.permute.xlu0 %v2044_v1 }
 0xd5d   :  { %1944 = vset.pattern.permute.xlu1 %v2045_v4 }
 0xd5e   :  { %1252 = vperm.xlu1 %1944, %v2402_v39  }
 0xd62   :  { %1946 = vset.pattern.permute.xlu1 %v2044_v1 }
 0xdcb   :  { %v1222_v46 = vpop.permute.xlu1 %1221  ;;  %v1237_v23 = vpop.permute.xlu0 %1236 }
 0xdcc   :  { %v1233_v63 = vmul.f32 %v1232_v59, %v1222_v46  ;;  %v1247_v6 = vmul.f32 %v1246_v60, %v1237_v23 }
 0xdce   :  { %v1249_v14 = vadd.f32 %v1247_v6, %v1233_v63 }
 0xdcf   :  { %v1227_v58 = vpop.permute.xlu1 %1226 }
 0xdd0   :  { %v1234_v8 = vmul.f32 %v1232_v59, %v1227_v58  ;;  %v1257_v11 = vpop.permute.xlu0 %1256 }
 0xdd1   :  { %v1264_v16 = vmul.f32 %v1262_v10, %v1257_v11 }
 0xdd4   :  { %v1241_v61 = vpop.permute.xlu1 %1240 }
 0xdd5   :  { %v1248_v62 = vmul.f32 %v1246_v60, %v1241_v61 }
 0xdd7   :  { %v1250_v1 = vadd.f32 %v1248_v62, %v1234_v8 }
 0xdd9   :  { %v1253_v37 = vpop.permute.xlu1 %1252  ;;  %v1266_v17 = vadd.f32 %v1264_v16, %v1250_v1 }
 0xdda   :  { %v1263_v38 = vmul.f32 %v1262_v10, %v1253_v37 }
 0xddc   :  { %v1265_v18 = vadd.f32 %v1263_v38, %v1249_v14 }
 0xdde   :  { %v1267_v19 = vpack.c.bf16 %v1266_v17, %v1265_v18 }
 0xde0   :  { %1337 = vrot.lane.b32.xlu0 %v1267_v19, %s2050_s19  ;;  %1269 = vrot.lane.b32.xlu1 %v1267_v19, %s2049_s18 }
 0xde4   :  { %1339 = vrot.lane.b32.xlu1 %v1267_v19, %s2048_s17 }
 0xe52   :  { %v1270_v45 = vpop.permute.xlu1 %1269  ;;  %v1338_v5 = vpop.permute.xlu0 %1337 }
 0xe53   :  { %v1275_v22 = vsel %vm75_vm1, %v1270_v45, 0 }
 0xe54   :  { %1885 = vmatpush3.bf16.xpose.msra.mxu0 %v1275_v22 }
 0xe55   :  { %1896 = vmatprep.subr.bf16.mxu0 %v2046_v15 }
 0xe56   :  { %v1340_v25 = vpop.permute.xlu1 %1339 }
 0xe57   :  { %v1345_v48 = vsel %vm75_vm1, %v1340_v25, 0 }
 0xe58   :  { %1891 = vmatpush3.bf16.xpose.msra.mxu1 %v1345_v48 }
 0xe59   :  { %1902 = vmatprep.subr.bf16.mxu1 %v2046_v15 }
 0xe5b   :  { %1887 = vmatmul.mubr.msk.bf16.vlgmr.msra.gmra.mxu0 %vm75_vm1, %v1267_v19 }
 0xe5c   :  { %1898 = vmatprep.mubr.msk.bf16.mxu0 %vm2047_vm0, %v2046_v15 }
 0xe5f   :  { %1893 = vmatmul.mubr.msk.bf16.vlgmr.msra.gmra.mxu1 %vm75_vm1, %v1338_v5 }
 0xe60   :  { %1904 = vmatprep.mubr.msk.bf16.mxu1 %vm2047_vm0, %v2046_v15 }
 0xf1b   :  { %v1311_v12 = vpop.f32.mrf.mxu0 }
 0xf1c   :  { %v1318_v21 = vmul.f32 %v2039_v20, %v1311_v12 }
 0xf1d   :  { %v1888_v27 = vpop.f32.mrf.mxu0 }
 0xf1e   :  { %v1320_v29 = vadd.f32 %v2040_v28, %v1318_v21 }
 0xf1f   :  { %v1314_v30 = vpop.f32.mrf.mxu0  ;;  %v1381_v32 = vpop.f32.mrf.mxu1 }
 0xf20   :  { %v1322_v33 = vmul.f32 1.442695, %v1320_v29  ;;  %v1319_v15 = vmul.f32 %v2041_v34, %v1314_v30  ;;  %v1388_v51 = vmul.f32 %v2039_v20, %v1381_v32 }
 0xf21   :  { %v1889_v35 = vpop.f32.mrf.mxu0  ;;  %v1894_v40 = vpop.f32.mrf.mxu1 }
 0xf22   :  { %2015 = vpow2.f32 %v1322_v33  ;;  %v1321_v42 = vadd.f32 %v2042_v41, %v1319_v15  ;;  %v1390_v43 = vadd.f32 %v2040_v28, %v1388_v51 }
 0xf23   :  { %v1384_v24 = vpop.f32.mrf.mxu1 }
 0xf24   :  { %v1392_v31 = vmul.f32 1.442695, %v1390_v43  ;;  %v1389_v36 = vmul.f32 %v2041_v34, %v1384_v24  ;;  %v1324_v56 = vmul.f32 1.442695, %v1321_v42  ;;  %v1504_v34 = vld [vmem:[%s2530_s2 + $0x78] sm:$0xff] }
 0xf25   :  { %v1895_v44 = vpop.f32.mrf.mxu1 }
 0xf26   :  { %v1391_v2 = vadd.f32 %v2042_v41, %v1389_v36  ;;  %2017 = vpow2.f32 %v1392_v31 }
 0xf27   :  { %2019 = vpow2.f32 %v1324_v56 }
 0xf28   :  { %v1394_v50 = vmul.f32 1.442695, %v1391_v2 }
 0xf2a   :  { %2021 = vpow2.f32 %v1394_v50 }
 0xf2f   :  { %v2016_v53 = vpop.eup %2015 }
 0xf30   :  { %v1326_v54 = vsel %vm131_vm2, %v2016_v53, 0.0 }
 0xf31   :  { %1327 = vadd.xlane.f32.xlu1 %v1326_v54 }
 0xf33   :  { %v2018_v55 = vpop.eup %2017 }
 0xf34   :  { %v1396_v52 = vsel %vm131_vm2, %v2018_v55, 0.0  ;;  %v2020_v26 = vpop.eup %2019 }
 0xf35   :  { %1397 = vadd.xlane.f32.xlu0 %v1396_v52  ;;  %v1329_v47 = vsel %vm131_vm2, %v2020_v26, 0.0 }
 0xf37   :  { %v2022_v3 = vpop.eup %2021 }
 0xf38   :  { %v1399_v46 = vsel %vm131_vm2, %v2022_v3, 0.0 }
 0xf39   :  { %1400 = vadd.xlane.f32.xlu1 %v1399_v46  ;;  %1330 = vadd.xlane.f32.xlu0 %v1329_v47 }
 0xf4a   :  { %1454 = vrot.lane.b32.xlu1 %v1267_v19, %s2052_s29 }
 0xf4f   :  { %1407 = vrot.lane.b32.xlu0 %v1267_v19, %s2051_s28 }
 0xfba   :  { %v1328_v58 = vpop.xlane.xlu1 %1327 }
 0xfbe   :  { %v1398_v23 = vpop.xlane.xlu0 %1397 }
 0xfbf   :  { %2023 = vrcp.f32 %v1398_v23 }
 0xfc0   :  { %2025 = vrcp.f32 %v1328_v58 }
 0xfc2   :  { %v1401_v59 = vpop.xlane.xlu1 %1400  ;;  %v1331_v60 = vpop.xlane.xlu0 %1330 }
 0xfc3   :  { %2027 = vrcp.f32 %v1401_v59 }
 0xfc4   :  { %2029 = vrcp.f32 %v1331_v60 }
 0xfc6   :  { %v1455_v61 = vpop.permute.xlu1 %1454  ;;  %v1408_v62 = vpop.permute.xlu0 %1407 }
 0xfc7   :  { %1903 = vmatpush3.bf16.msra.mxu1 %v1455_v61  ;;  %1897 = vmatpush3.bf16.msra.mxu0 %v1408_v62 }
 0xfcc   :  { %v2024_v63 = vpop.eup %2023 }
 0xfcd   :  { %v2026_v6 = vpop.eup %2025  ;;  %v1404_v11 = vmul.f32 %v2024_v63, %v2018_v55 }
 0xfce   :  { %v1334_v37 = vmul.f32 %v2026_v6, %v2016_v53 }
 0xfd0   :  { %v2028_v8 = vpop.eup %2027 }
 0xfd1   :  { %v2030_v10 = vpop.eup %2029  ;;  %v1405_v1 = vmul.f32 %v2028_v8, %v2022_v3 }
 0xfd2   :  { %v1335_v14 = vmul.f32 %v2030_v10, %v2020_v26 }
 0xfd3   :  { %v1406_v16 = vpack.c.bf16 %v1405_v1, %v1404_v11 }
 0xfd4   :  { %v1336_v38 = vpack.c.bf16 %v1335_v14, %v1334_v37 }
 0xfd5   :  { %1899 = vmatmul.mubr.msk.bf16.vlgmr.msra.gmra.mxu0 %vm131_vm2, %v1406_v16 }
 0xfd6   :  { %1905 = vmatmul.mubr.msk.bf16.vlgmr.msra.gmra.mxu1 %vm131_vm2, %v1336_v38 }
0x1095   :  { %v1447_v17 = vpop.f32.mrf.mxu0 }
0x1096   :  { %v1494_v18 = vpop.f32.mrf.mxu1 }
0x1097   :  { %v1495_v19 = vadd.f32 %v1494_v18, %v1447_v17  ;;  %v1900_v45 = vpop.f32.mrf.mxu0 }
0x1098   :  { %v1906_v22 = vpop.f32.mrf.mxu1 }
0x1099   :  { %v2457_v25 = vadd.f32 %v1495_v19, %v2402_v39  ;;  %v1450_v48 = vpop.f32.mrf.mxu0 }
0x109a   :  { %v1497_v5 = vpop.f32.mrf.mxu1 }
0x109b   :  { %v1498_v12 = vadd.f32 %v1497_v5, %v1450_v48  ;;  %v1505_v20 = vsel %vm75_vm1, %v2457_v25, 0.0  ;;  %v1901_v21 = vpop.f32.mrf.mxu0  ;;  %v1523_v32 = vmul.f32 %v2457_v25, %v2457_v25 }
0x109c   :  { %v1907_v27 = vpop.f32.mrf.mxu1  ;;  %1506 = vadd.xlane.f32.xlu1 %v1505_v20 }
0x109d   :  { %v1502_v28 = vadd.f32 %v1498_v12, %v2406_v57  ;;  %v1525_v33 = vsel %vm75_vm1, %v1523_v32, 0.0  ;;  %v1503_v57 = vld [vmem:[%s2530_s2 + $0x70] sm:$0xff] }
0x109f   :  { %v1508_v29 = vsel %vm75_vm1, %v1502_v28, 0.0  ;;  %v1524_v30 = vmul.f32 %v1502_v28, %v1502_v28 }
0x10a0   :  { %1509 = vadd.xlane.f32.xlu0 %v1508_v29 }
0x10a1   :  { %v1528_v39 = vsel %vm75_vm1, %v1524_v30, 0.0 }
0x10a2   :  { %1529 = vadd.xlane.f32.xlu1 %v1528_v39  ;;  %v1573_v39 = vld [vmem:[%s2530_s2 + $0x28] sm:$0xf] }
0x10a4   :  { %1526 = vadd.xlane.f32.xlu0 %v1525_v33  ;;  %v1601_v33 = vrot.slane %v1573_v39, %v2102_v7 }
0x10b3   :  { %1567 = vrot.lane.b32.xlu1 %v1504_v34, %s2049_s18 }
0x10ba   :  { %1565 = vrot.lane.b32.xlu0 %v1503_v57, %s2049_s18 }
0x1125   :  { %v1507_v15 = vpop.xlane.xlu1 %1506 }
0x1126   :  { %v1511_v51 = vrot.slane %v1507_v15, 4 }
0x1128   :  { %v1512_v35 = vadd.f32 %v1511_v51, %v1507_v15 }
0x1129   :  { %v1510_v40 = vpop.xlane.xlu0 %1509 }
0x112a   :  { %v1513_v41 = vrot.slane %v1512_v35, 2  ;;  %v1517_v42 = vrot.slane %v1510_v40, 4 }
0x112b   :  { %v1530_v43 = vpop.xlane.xlu1 %1529 }
0x112c   :  { %v1514_v24 = vadd.f32 %v1513_v41, %v1512_v35  ;;  %v1518_v31 = vadd.f32 %v1517_v42, %v1510_v40  ;;  %v1537_v36 = vrot.slane %v1530_v43, 4 }
0x112d   :  { %v1527_v56 = vpop.xlane.xlu0 %1526 }
0x112e   :  { %v1515_v44 = vrot.slane %v1514_v24, 1  ;;  %v1519_v2 = vrot.slane %v1518_v31, 2  ;;  %v1538_v50 = vadd.f32 %v1537_v36, %v1530_v43  ;;  %v1531_v53 = vrot.slane %v1527_v56, 4 }
0x112f   :  { %v1568_v12 = vpop.permute.xlu1 %1567 }
0x1130   :  { %v1520_v54 = vadd.f32 %v1519_v2, %v1518_v31  ;;  %v1539_v55 = vrot.slane %v1538_v50, 2  ;;  %v1532_v52 = vadd.f32 %v1531_v53, %v1527_v56  ;;  %v1516_v26 = vadd.f32 %v1515_v44, %v1514_v24 }
0x1131   :  { %v1566_v27 = vpop.permute.xlu0 %1565 }
0x1132   :  { %v1521_v3 = vrot.slane %v1520_v54, 1  ;;  %v1540_v46 = vadd.f32 %v1539_v55, %v1538_v50  ;;  %v1533_v47 = vrot.slane %v1532_v52, 2  ;;  %v1543_v60 = vmul.f32 0.041666668, %v1516_v26 }
0x1134   :  { %v1522_v58 = vadd.f32 %v1521_v3, %v1520_v54  ;;  %v1541_v23 = vrot.slane %v1540_v46, 1  ;;  %v1534_v59 = vadd.f32 %v1533_v47, %v1532_v52  ;;  %v1547_v11 = vmul.f32 %v1543_v60, %v1543_v60 }
0x1135   :  { %v1553_v48 = vsub.f32 %v2457_v25, %v1543_v60  ;;  %v1633_v60 = vld [vmem:[%s2530_s2 + $0x88] sm:$0xff] }
0x1136   :  { %v1544_v61 = vmul.f32 0.041666668, %v1522_v58  ;;  %v1542_v62 = vadd.f32 %v1541_v23, %v1540_v46  ;;  %v1535_v63 = vrot.slane %v1534_v59, 1 }
0x1138   :  { %v1548_v6 = vmul.f32 %v1544_v61, %v1544_v61  ;;  %v1546_v8 = vmul.f32 0.041666668, %v1542_v62  ;;  %v1536_v10 = vadd.f32 %v1535_v63, %v1534_v59  ;;  %v1554_v19 = vsub.f32 %v1502_v28, %v1544_v61  ;;  %v2506_v61 = vld [vmem:[%s2530_s2 + $0x90] sm:$0xf]  ;;  %v1632_v63 = vld [vmem:[%s2530_s2 + $0x80] sm:$0xff]  ;;  %s2055_s2 = smov 127  }
0x1139   :  { %v1712_v62 = vrot.slane %v2506_v61, %v2102_v7 }
0x113a   :  { %v1550_v1 = vsub.f32 %v1546_v8, %v1548_v6  ;;  %v1545_v37 = vmul.f32 0.041666668, %v1536_v10  ;;  %v1732_v6 = vrot.slane %v2506_v61, %v2112_v13 }
0x113c   :  { %v1552_v14 = vmax.f32 %v1550_v1, 0.0  ;;  %v1549_v16 = vsub.f32 %v1545_v37, %v1547_v11 }
0x113e   :  { %v1556_v38 = vadd.f32 1e-05, %v1552_v14  ;;  %v1551_v17 = vmax.f32 %v1549_v16, 0.0 }
0x1140   :  { %2031 = vrsqrt.f32 %v1556_v38  ;;  %v1555_v18 = vadd.f32 1e-05, %v1551_v17 }
0x1142   :  { %2033 = vrsqrt.f32 %v1555_v18 }
0x114d   :  { %v2032_v45 = vpop.eup %2031 }
0x114e   :  { %v1560_v22 = vmul.f32 %v2032_v45, %v1554_v19 }
0x114f   :  { %v2034_v5 = vpop.eup %2033 }
0x1150   :  { %v1562_v20 = vmul.f32 %v1560_v22, %v1504_v34  ;;  %v1559_v21 = vmul.f32 %v2034_v5, %v1553_v48  ;;  %v1587_v34 = vrot.slane %v1573_v39, %v2108_v9 }
0x1152   :  { %v1572_v29 = vadd.f32 %v1568_v12, %v1562_v20  ;;  %v1561_v30 = vmul.f32 %v1559_v21, %v1503_v57  ;;  %v1617_v57 = vrot.slane %v1573_v39, %v2112_v13 }
0x1154   :  { %v1571_v32 = vadd.f32 %v1566_v27, %v1561_v30  ;;  %1581 = vperm.xlu0 %1948, %v1572_v29  }
0x1156   :  { %1576 = vperm.xlu1 %1946, %v1571_v32  }
0x1158   :  { %1949 = vset.pattern.permute.xlu0 %v2045_v4 }
0x1159   :  { %1607 = vperm.xlu0 %1949, %v1571_v32  }
0x115a   :  { %1947 = vset.pattern.permute.xlu1 %v2043_v0 }
0x115b   :  { %1591 = vperm.xlu1 %1947, %v1571_v32  }
0x115f   :  { %1595 = vperm.xlu1 %1947, %v1572_v29  }
0x1163   :  { %1950 = vset.pattern.permute.xlu1 %v2045_v4  ;;  %v1625_v4 = vrot.slane %v1573_v39, %v2299_v49 }
0x1164   :  { %1611 = vperm.xlu1 %1950, %v1572_v29  }
0x11cf   :  { %v1582_v25 = vpop.permute.xlu0 %1581 }
0x11d0   :  { %v1589_v36 = vmul.f32 %v1587_v34, %v1582_v25 }
0x11d1   :  { %v1577_v28 = vpop.permute.xlu1 %1576 }
0x11d2   :  { %v1588_v0 = vmul.f32 %v1587_v34, %v1577_v28 }
0x11d4   :  { %v1608_v15 = vpop.permute.xlu0 %1607 }
0x11d5   :  { %v1618_v40 = vmul.f32 %v1617_v57, %v1608_v15 }
0x11d6   :  { %v1592_v51 = vpop.permute.xlu1 %1591 }
0x11d7   :  { %v1602_v35 = vmul.f32 %v1601_v33, %v1592_v51 }
0x11d9   :  { %v1604_v41 = vadd.f32 %v1602_v35, %v1588_v0 }
0x11da   :  { %v1596_v42 = vpop.permute.xlu1 %1595 }
0x11db   :  { %v1620_v43 = vadd.f32 %v1618_v40, %v1604_v41  ;;  %v1603_v24 = vmul.f32 %v1601_v33, %v1596_v42 }
0x11dd   :  { %v1626_v31 = vadd.f32 %v1625_v4, %v1620_v43  ;;  %v1605_v2 = vadd.f32 %v1603_v24, %v1589_v36 }
0x11df   :  { %v1628_v56 = vmax.f32 %v1626_v31, 0.0  ;;  %v1612_v44 = vpop.permute.xlu1 %1611 }
0x11e0   :  { %v1619_v50 = vmul.f32 %v1617_v57, %v1612_v44 }
0x11e1   :  { %v2486_v53 = vadd.f32 %v1628_v56, %v1571_v32 }
0x11e2   :  { %v1621_v54 = vadd.f32 %v1619_v50, %v1605_v2 }
0x11e3   :  { %v1634_v55 = vsel %vm75_vm1, %v2486_v53, 0.0  ;;  %v1652_v58 = vmul.f32 %v2486_v53, %v2486_v53 }
0x11e4   :  { %v1627_v52 = vadd.f32 %v1625_v4, %v1621_v54  ;;  %1635 = vadd.xlane.f32.xlu1 %v1634_v55 }
0x11e5   :  { %v1654_v59 = vsel %vm75_vm1, %v1652_v58, 0.0 }
0x11e6   :  { %v1629_v26 = vmax.f32 %v1627_v52, 0.0 }
0x11e8   :  { %v2490_v3 = vadd.f32 %v1629_v26, %v1572_v29 }
0x11ea   :  { %v1637_v46 = vsel %vm75_vm1, %v2490_v3, 0.0  ;;  %v1653_v47 = vmul.f32 %v2490_v3, %v2490_v3 }
0x11eb   :  { %1638 = vadd.xlane.f32.xlu0 %v1637_v46 }
0x11ec   :  { %v1657_v23 = vsel %vm75_vm1, %v1653_v47, 0.0 }
0x11ed   :  { %1658 = vadd.xlane.f32.xlu1 %v1657_v23 }
0x11ef   :  { %1655 = vadd.xlane.f32.xlu0 %v1654_v59 }
0x11fe   :  { %1696 = vrot.lane.b32.xlu1 %v1633_v60, %s2049_s18 }
0x1202   :  { %1714 = vrot.lane.b32.xlu1 %v1712_v62, %s2053_s21 }
0x1205   :  { %1694 = vrot.lane.b32.xlu0 %v1632_v63, %s2049_s18  ;;  %s2056_s18 = smov 126  }
0x1209   :  { %1734 = vrot.lane.b32.xlu0 %v1732_v6, %s2054_s22 }
0x126d   :  { %v1636_v8 = vpop.xlane.xlu1 %1635 }
0x126e   :  { %v1640_v10 = vrot.slane %v1636_v8, 4 }
0x1270   :  { %v1641_v11 = vadd.f32 %v1640_v10, %v1636_v8 }
0x1272   :  { %v1642_v1 = vrot.slane %v1641_v11, 2 }
0x1274   :  { %v1639_v37 = vpop.xlane.xlu0 %1638  ;;  %v1643_v14 = vadd.f32 %v1642_v1, %v1641_v11  ;;  %v1752_v1 = vrot.slane %v2506_v61, %v2299_v49 }
0x1275   :  { %v1646_v7 = vrot.slane %v1639_v37, 4 }
0x1276   :  { %v1659_v16 = vpop.xlane.xlu1 %1658  ;;  %v1644_v19 = vrot.slane %v1643_v14, 1 }
0x1277   :  { %v1647_v38 = vadd.f32 %v1646_v7, %v1639_v37  ;;  %v1666_v17 = vrot.slane %v1659_v16, 4 }
0x1278   :  { %v1656_v18 = vpop.xlane.xlu0 %1655  ;;  %v1645_v20 = vadd.f32 %v1644_v19, %v1643_v14 }
0x1279   :  { %v1648_v45 = vrot.slane %v1647_v38, 2  ;;  %v1667_v22 = vadd.f32 %v1666_v17, %v1659_v16  ;;  %v1660_v48 = vrot.slane %v1656_v18, 4 }
0x127a   :  { %v1672_v28 = vmul.f32 0.041666668, %v1645_v20  ;;  %v1697_v31 = vpop.permute.xlu1 %1696 }
0x127b   :  { %v1649_v5 = vadd.f32 %v1648_v45, %v1647_v38  ;;  %v1668_v12 = vrot.slane %v1667_v22, 2  ;;  %v1661_v13 = vadd.f32 %v1660_v48, %v1656_v18 }
0x127c   :  { %v1676_v0 = vmul.f32 %v1672_v28, %v1672_v28  ;;  %v1682_v2 = vsub.f32 %v2486_v53, %v1672_v28  ;;  %v1695_v54 = vpop.permute.xlu0 %1694  ;;  %v1706_v53 = vrot.slane %v2506_v61, %v2108_v9 }
0x127d   :  { %v1650_v21 = vrot.slane %v1649_v5, 1  ;;  %v1669_v27 = vadd.f32 %v1668_v12, %v1667_v22  ;;  %v1662_v29 = vrot.slane %v1661_v13, 2 }
0x127e   :  { %v1715_v26 = vpop.permute.xlu1 %1714 }
0x127f   :  { %v1651_v30 = vadd.f32 %v1650_v21, %v1649_v5  ;;  %v1670_v32 = vrot.slane %v1669_v27, 1  ;;  %v1663_v25 = vadd.f32 %v1662_v29, %v1661_v13 }
0x1280   :  { %v1735_v59 = vpop.permute.xlu0 %1734 }
0x1281   :  { %v1673_v39 = vmul.f32 0.041666668, %v1651_v30  ;;  %v1671_v33 = vadd.f32 %v1670_v32, %v1669_v27  ;;  %v1664_v34 = vrot.slane %v1663_v25, 1 }
0x1283   :  { %v1677_v57 = vmul.f32 %v1673_v39, %v1673_v39  ;;  %v1675_v15 = vmul.f32 0.041666668, %v1671_v33  ;;  %v1665_v51 = vadd.f32 %v1664_v34, %v1663_v25  ;;  %v1683_v36 = vsub.f32 %v2490_v3, %v1673_v39 }
0x1285   :  { %v1679_v35 = vsub.f32 %v1675_v15, %v1677_v57  ;;  %v1674_v40 = vmul.f32 0.041666668, %v1665_v51 }
0x1287   :  { %v1681_v4 = vmax.f32 %v1679_v35, 0.0  ;;  %v1678_v41 = vsub.f32 %v1674_v40, %v1676_v0 }
0x1289   :  { %v1685_v42 = vadd.f32 1e-05, %v1681_v4  ;;  %v1680_v43 = vmax.f32 %v1678_v41, 0.0 }
0x128b   :  { %2035 = vrsqrt.f32 %v1685_v42  ;;  %v1684_v24 = vadd.f32 1e-05, %v1680_v43 }
0x128d   :  { %2037 = vrsqrt.f32 %v1684_v24 }
0x1298   :  { %v2036_v56 = vpop.eup %2035 }
0x1299   :  { %v1689_v44 = vmul.f32 %v2036_v56, %v1683_v36 }
0x129a   :  { %v2038_v50 = vpop.eup %2037 }
0x129b   :  { %v1691_v55 = vmul.f32 %v1689_v44, %v1633_v60  ;;  %v1688_v52 = vmul.f32 %v2038_v50, %v1682_v2 }
0x129d   :  { %v1701_v46 = vadd.f32 %v1697_v31, %v1691_v55  ;;  %v1690_v47 = vmul.f32 %v1688_v52, %v1632_v63 }
0x129f   :  { %v1700_v58 = vadd.f32 %v1695_v54, %v1690_v47  ;;  %v1718_v23 = vmul.f32 %v1715_v26, %v1701_v46  ;;  %v1738_v6 = vmul.f32 %v1735_v59, %v1701_v46  ;;  %v1708_v8 = vmul.f32 %v1706_v53, %v1701_v46 }
0x12a1   :  { %v1717_v62 = vmul.f32 %v1715_v26, %v1700_v58  ;;  %1723 = vrot.lane.b32.xlu0 %v1718_v23, %s2055_s2  ;;  %v1737_v3 = vmul.f32 %v1735_v59, %v1700_v58  ;;  %v1707_v63 = vmul.f32 %v1706_v53, %v1700_v58 }
0x12a3   :  { %1721 = vrot.lane.b32.xlu1 %v1717_v62, %s2055_s2 }
0x12a5   :  { %1743 = vrot.lane.b32.xlu0 %v1738_v6, %s2056_s18 }
0x12a7   :  { %1741 = vrot.lane.b32.xlu1 %v1737_v3, %s2056_s18 }
0x1313   :  { %v1724_v60 = vpop.permute.xlu0 %1723 }
0x1314   :  { %v1728_v11 = vadd.f32 %v1724_v60, %v1708_v8 }
0x1315   :  { %v1722_v10 = vpop.permute.xlu1 %1721 }
0x1316   :  { %v1727_v14 = vadd.f32 %v1722_v10, %v1707_v63 }
0x1317   :  { %v1744_v37 = vpop.permute.xlu0 %1743 }
0x1318   :  { %v1748_v7 = vadd.f32 %v1744_v37, %v1728_v11 }
0x1319   :  { %v1742_v16 = vpop.permute.xlu1 %1741 }
0x131a   :  { %v1754_v38 = vadd.f32 %v1752_v1, %v1748_v7  ;;  %v1747_v17 = vadd.f32 %v1742_v16, %v1727_v14 }
0x131c   :  { %1757 = vst.msk [vmem:[%s2532_s3 + $0x8] sm:$0xff] %vm1755_vm3, %v1754_v38  ;;  %v1753_v9 = vadd.f32 %v1752_v1, %v1747_v17 }
0x131e   :  { %1756 = vst.msk [vmem:[%s2532_s3] sm:$0xff] %vm1755_vm3, %v1753_v9 }

</bundles_post_ra>
